<compile_context>
chip_gen: v7x
topology: tpu7x:2x2x1
jax: 0.10.0
libtpu: 0.0.40
codegen_flags: <defaults>
</compile_context>

<pallas_src>
import functools
import numpy as np
import jax
import jax.numpy as jnp
from jax.experimental import pallas as pl
from jax.experimental.pallas import tpu as pltpu

NEG_SLOPE = 0.01  # nn.LeakyReLU default


def _leaky_relu(x):
    return jnp.where(x >= 0, x, NEG_SLOPE * x)


def rnn_stack_kernel(data_ref, w_in_ref, cb_ref, decay_ref, w_hh_ref,
                     w_hi_ref, wt_fc_ref, b_fc_ref, out_ref):
    """Full forward pass of RNN_stack (single invocation, no grid).

    data_ref  : [T, B, I]      input sequence
    w_in_ref  : [L, I, H]      input weights per layer, pre-scaled by 1/tau_i
    cb_ref    : [L, 1, H]      (b_in + b_hh_i + b_hi_{i-1}) * 1/tau_i
    decay_ref : [L, 1, H]      (1 - 1/tau_i), broadcast over H
    w_hh_ref  : [L, H, H]      recurrent weights (diag zeroed), * 1/tau_i
    w_hi_ref  : [max(L-1,1), H, H]  cross-layer weights, * 1/tau_i (dest layer)
    wt_fc_ref : [H, PAD]       fused readout weights, zero-padded to PAD lanes
    b_fc_ref  : [1, PAD]       fused readout bias, zero-padded
    out_ref   : [B, L*H+PAD]   [h_0 | h_1 | ... | h_{L-1} | readout+pad]
    """
    T, B, I = data_ref.shape
    L, H, _ = w_hh_ref.shape

    # ---- hoisted weight / constant loads (outside the recurrence) ----------
    w_hh = [w_hh_ref[i] for i in range(L)]                    # [H, H] each
    w_hi = [w_hi_ref[i] for i in range(L - 1)]                # [H, H] each
    decay = [decay_ref[i] for i in range(L)]                  # [1, H] each

    # ---- per-layer input drive for ALL timesteps, hoisted (VPU only) -------
    # I is tiny (=1) so this is a pure broadcast-multiply; the combined
    # per-layer bias (already scaled by 1/tau_i) is folded in here once.
    data_all = data_ref[...]                                  # [T, B, I]
    drive = []
    for i in range(L):
        w_in_i = w_in_ref[i]                                  # [I, H]
        d = data_all[:, :, 0:1] * w_in_i[0:1, :]
        for ii in range(1, I):
            d = d + data_all[:, :, ii:ii + 1] * w_in_i[ii:ii + 1, :]
        drive.append(d + cb_ref[i])                           # [T, B, H]

    # ---- recurrence: per-layer states, fully unrolled -----------------------
    # Keeping h[i] as separate values makes layer i's step-t recurrent matmul
    # depend only on h[i](t-1) -> dependent-MXU chain = T + L - 1, and avoids
    # any per-step lane slicing / concatenation.
    h = [jnp.zeros((B, H), jnp.float32) for _ in range(L)]

    for t in range(T):
        for i in range(L):
            pre = (jnp.dot(h[i], w_hh[i], preferred_element_type=jnp.float32)
                   + drive[i][t] + decay[i] * h[i])
            if i > 0:
                # Uses the *already updated* h[i-1] of this time step, exactly
                # like the in-place list update in the PyTorch code.
                pre = pre + jnp.dot(h[i - 1], w_hi[i - 1],
                                    preferred_element_type=jnp.float32)
            h[i] = _leaky_relu(pre)

    # ---- epilogue: fused readout into the pad lanes, ONE unmasked store -----
    out_pad = (jnp.dot(h[L - 1], wt_fc_ref[...],
                       preferred_element_type=jnp.float32)
               + b_fc_ref[...])                               # [B, PAD]
    out_ref[...] = jnp.concatenate(h + [out_pad], axis=-1)    # [B, L*H+PAD]


def prepare_rnn_stack_params(wt_in, b_in, wt_hh, b_hh, wt_hi, b_hi,
                             wt_fc, b_fc, taus):
    """One-time, host-side (numpy) preprocessing of the module's weights.

    All Linear weights are expected PRE-TRANSPOSED as [in, out]
    (i.e. y = x @ Wt + b, identical to nn.Linear's x @ W.T + b).
    Returns a dict of device arrays consumed by rnn_stack_forward().
    """
    wt_in = np.asarray(wt_in, np.float32)                 # [I, H]
    b_in = np.asarray(b_in, np.float32).reshape(-1)       # [H]
    wt_hh = np.asarray(wt_hh, np.float32)                 # [L, H, H]
    b_hh = np.asarray(b_hh, np.float32)                   # [L, H]
    wt_hi = np.asarray(wt_hi, np.float32)                 # [L-1, H, H]
    b_hi = np.asarray(b_hi, np.float32)                   # [L-1, H]
    wt_fc = np.asarray(wt_fc, np.float32)                 # [R, H, C]
    b_fc = np.asarray(b_fc, np.float32)                   # [R, C]
    taus = np.asarray(taus, np.float32)                   # [L]

    L, H, _ = wt_hh.shape
    R, _, C = wt_fc.shape

    inv_tau = (1.0 / taus).astype(np.float32)
    dec = (1.0 - inv_tau).astype(np.float32)

    # forward() zeroes the diagonal of every w_hh before using it; fold 1/tau.
    eye = np.eye(H, dtype=np.float32)
    w_hh_s = wt_hh * (1.0 - eye)[None] * inv_tau[:, None, None]
    if L > 1:
        w_hi_s = wt_hi * inv_tau[1:, None, None]
    else:
        w_hi_s = np.zeros((1, H, H), np.float32)           # dummy, never read

    # Input weights per layer, pre-scaled by 1/tau_i.
    w_in_s = wt_in[None] * inv_tau[:, None, None]           # [L, I, H]

    # Combined per-layer bias (b_in + b_hh_i + b_hi_{i-1}) * 1/tau_i.
    cb = np.zeros((L, 1, H), np.float32)
    for i in range(L):
        b = b_in + b_hh[i]
        if i > 0:
            b = b + b_hi[i - 1]
        cb[i, 0] = b * inv_tau[i]

    decay_arr = np.zeros((L, 1, H), np.float32)
    decay_arr[:, 0, :] = dec[:, None]

    # Fused readout heads, zero-padded so they land in the unused lanes of the
    # single lane-dense [B, HP] output.
    LH = L * H
    HP = max(128, int(-(-(LH + R * C) // 128)) * 128)
    PAD = HP - LH
    wt_fc_pad = np.zeros((H, PAD), np.float32)
    wt_fc_pad[:, :R * C] = np.transpose(wt_fc, (1, 0, 2)).reshape(H, R * C)
    b_fc_pad = np.zeros((1, PAD), np.float32)
    b_fc_pad[0, :R * C] = b_fc.reshape(-1)

    return dict(
        w_in=jnp.asarray(w_in_s), cb=jnp.asarray(cb), decay=jnp.asarray(decay_arr),
        w_hh=jnp.asarray(w_hh_s), w_hi=jnp.asarray(w_hi_s),
        wt_fc=jnp.asarray(wt_fc_pad), b_fc=jnp.asarray(b_fc_pad))


@functools.partial(jax.jit, static_argnames=("num_readout_heads", "num_classes"))
def rnn_stack_forward(data, params, *, num_readout_heads, num_classes):
    """Returns (hs, out) like the PyTorch module:
       hs  -> list of L arrays [B, H] (final hidden state per layer)
       out -> list of R arrays [B, C] (one per readout head)."""
    T, B, I = data.shape
    L, H, _ = params["w_hh"].shape
    PAD = params["wt_fc"].shape[1]
    HP = L * H + PAD
    R, C = num_readout_heads, num_classes

    flops = (2 * T * B * H * H * (2 * L - 1)       # recurrent + cross matmuls
             + 2 * T * B * I * L * H               # input projection
             + 2 * B * H * PAD)                    # readout
    bytes_accessed = 4 * int(
        np.prod(data.shape)
        + sum(int(np.prod(v.shape)) for v in params.values())
        + B * HP)

    vm = pl.BlockSpec(memory_space=pltpu.MemorySpace.VMEM)

    out_full = pl.pallas_call(
        rnn_stack_kernel,
        out_shape=jax.ShapeDtypeStruct((B, HP), jnp.float32),
        in_specs=[vm] * 8,
        out_specs=vm,
        cost_estimate=pl.CostEstimate(flops=flops, transcendentals=0,
                                      bytes_accessed=bytes_accessed),
    )(data, params["w_in"], params["cb"], params["decay"],
      params["w_hh"], params["w_hi"], params["wt_fc"], params["b_fc"])

    hs = [out_full[:, i * H:(i + 1) * H] for i in range(L)]
    out = [out_full[:, L * H + r * C: L * H + (r + 1) * C] for r in range(R)]
    return hs, out


def rnn_stack_reference(data, wt_in, b_in, wt_hh, b_hh, wt_hi, b_hi,
                        wt_fc, b_fc, taus):
    """Pure-JAX mirror of the PyTorch forward, for correctness checking."""
    T, B, I = data.shape
    L, H, _ = wt_hh.shape
    R = wt_fc.shape[0]
    eye = jnp.eye(H, dtype=jnp.float32)
    wt_hh = wt_hh * (1.0 - eye)[None]    # fill_diagonal_(0.0)
    hs = [jnp.zeros((B, H), jnp.float32) for _ in range(L)]
    x = jnp.einsum('tbi,ih->tbh', data, wt_in) + b_in
    for t in range(T):
        inp = x[t]
        for i in range(L):
            tau = taus[i]
            pre = hs[i] @ wt_hh[i] + b_hh[i] + inp
            if i > 0:
                pre = pre + hs[i - 1] @ wt_hi[i - 1] + b_hi[i - 1]
            h = (1.0 - 1.0 / tau) * hs[i] + pre / tau
            hs[i] = jnp.where(h >= 0, h, NEG_SLOPE * h)
    out = [hs[-1] @ wt_fc[r] + b_fc[r] for r in range(R)]
    return hs, out


if __name__ == "__main__":
    # Small shapes consistent with the module's forward:
    #   data [T=8, B=8, I=1], net_size = [32, 32, 32], num_classes=2,
    #   num_readout_heads=1, tau=1.5 (train_tau=False, bias=True).
    T, B, I = 8, 8, 1
    H, L = 32, 3
    C, R = 2, 1
    tau = 1.5

    key = jax.random.PRNGKey(0)
    ks = jax.random.split(key, 10)

    def lin_init(k, fan_in, shape):
        bound = 1.0 / np.sqrt(fan_in)
        return jax.random.uniform(k, shape, jnp.float32, -bound, bound)

    # input layer  (nn.Linear(input_size, net_size[0]))
    w_in = lin_init(ks[0], I, (H, I))
    b_in = lin_init(ks[1], I, (H,)).reshape(1, H)
    wt_in = jnp.transpose(w_in)                       # [I, H]

    # recurrent layers w_hh (diagonal zeroed inside forward / reference)
    w_hh = lin_init(ks[2], H, (L, H, H))
    b_hh = lin_init(ks[3], H, (L, H))
    wt_hh = jnp.transpose(w_hh, (0, 2, 1))            # [L, H, H]   (in, out)

    # inter-layer connections w_hh_i
    w_hi = lin_init(ks[4], H, (L - 1, H, H))
    b_hi = lin_init(ks[5], H, (L - 1, H))
    wt_hi = jnp.transpose(w_hi, (0, 2, 1))            # [L-1, H, H] (in, out)

    # readout heads fc
    w_fc = lin_init(ks[6], H, (R, C, H))
    b_fc = lin_init(ks[7], H, (R, C))
    wt_fc = jnp.transpose(w_fc, (0, 2, 1))            # [R, H, C]   (in, out)

    taus = jnp.full((L,), tau, dtype=jnp.float32)
    data = jax.random.normal(ks[8], (T, B, I), dtype=jnp.float32)

    # One-time host-side weight preprocessing (feedback: hoist out of the
    # per-call path); the per-call path is a single jitted pallas_call.
    params = prepare_rnn_stack_params(wt_in, b_in, wt_hh, b_hh,
                                      wt_hi, b_hi, wt_fc, b_fc, taus)

    hs, out = rnn_stack_forward(data, params,
                                num_readout_heads=R, num_classes=C)
    jax.block_until_ready(hs)
    jax.block_until_ready(out)

    hs_ref, out_ref = rnn_stack_reference(data, wt_in, b_in, wt_hh, b_hh,
                                          wt_hi, b_hi, wt_fc, b_fc, taus)
    for i in range(L):
        np.testing.assert_allclose(np.asarray(hs[i]), np.asarray(hs_ref[i]),
                                   rtol=1e-4, atol=1e-5)
    for r in range(R):
        np.testing.assert_allclose(np.asarray(out[r]), np.asarray(out_ref[r]),
                                   rtol=1e-4, atol=1e-5)

    print("KERNEL_OK")
</pallas_src>

<mosaic_0001>
module attributes {stable_mosaic.version = 11 : i64} {
  func.func @rnn_stack_kernel(%arg0: memref<8x8x1xf32, #tpu.memory_space<vmem>>, %arg1: memref<3x1x32xf32, #tpu.memory_space<vmem>>, %arg2: memref<3x1x32xf32, #tpu.memory_space<vmem>>, %arg3: memref<3x1x32xf32, #tpu.memory_space<vmem>>, %arg4: memref<3x32x32xf32, #tpu.memory_space<vmem>>, %arg5: memref<2x32x32xf32, #tpu.memory_space<vmem>>, %arg6: memref<32x32xf32, #tpu.memory_space<vmem>>, %arg7: memref<1x32xf32, #tpu.memory_space<vmem>>, %arg8: memref<8x128xf32, #tpu.memory_space<vmem>>) attributes {dimension_semantics = [], scalar_prefetch = 0 : i64, scratch_operands = 0 : i64, tpu.core_type = #tpu.core_type<tc>} {
    %c0 = arith.constant 0 : index
    %c0_0 = arith.constant 0 : index
    %c0_1 = arith.constant 0 : index
    %0 = vector.load %arg4[%c0, %c0_0, %c0_1] : memref<3x32x32xf32, #tpu.memory_space<vmem>>, vector<1x32x32xf32>
    %1 = vector.shape_cast %0 : vector<1x32x32xf32> to vector<32x32xf32>
    %c1 = arith.constant 1 : index
    %c0_2 = arith.constant 0 : index
    %c0_3 = arith.constant 0 : index
    %2 = vector.load %arg4[%c1, %c0_2, %c0_3] : memref<3x32x32xf32, #tpu.memory_space<vmem>>, vector<1x32x32xf32>
    %3 = vector.shape_cast %2 : vector<1x32x32xf32> to vector<32x32xf32>
    %c2 = arith.constant 2 : index
    %c0_4 = arith.constant 0 : index
    %c0_5 = arith.constant 0 : index
    %4 = vector.load %arg4[%c2, %c0_4, %c0_5] : memref<3x32x32xf32, #tpu.memory_space<vmem>>, vector<1x32x32xf32>
    %5 = vector.shape_cast %4 : vector<1x32x32xf32> to vector<32x32xf32>
    %c0_6 = arith.constant 0 : index
    %c0_7 = arith.constant 0 : index
    %c0_8 = arith.constant 0 : index
    %6 = vector.load %arg5[%c0_6, %c0_7, %c0_8] : memref<2x32x32xf32, #tpu.memory_space<vmem>>, vector<1x32x32xf32>
    %7 = vector.shape_cast %6 : vector<1x32x32xf32> to vector<32x32xf32>
    %c1_9 = arith.constant 1 : index
    %c0_10 = arith.constant 0 : index
    %c0_11 = arith.constant 0 : index
    %8 = vector.load %arg5[%c1_9, %c0_10, %c0_11] : memref<2x32x32xf32, #tpu.memory_space<vmem>>, vector<1x32x32xf32>
    %9 = vector.shape_cast %8 : vector<1x32x32xf32> to vector<32x32xf32>
    %c0_12 = arith.constant 0 : index
    %c0_13 = arith.constant 0 : index
    %c0_14 = arith.constant 0 : index
    %10 = vector.load %arg3[%c0_12, %c0_13, %c0_14] : memref<3x1x32xf32, #tpu.memory_space<vmem>>, vector<1x1x32xf32>
    %11 = vector.shape_cast %10 : vector<1x1x32xf32> to vector<1x32xf32>
    %c1_15 = arith.constant 1 : index
    %c0_16 = arith.constant 0 : index
    %c0_17 = arith.constant 0 : index
    %12 = vector.load %arg3[%c1_15, %c0_16, %c0_17] : memref<3x1x32xf32, #tpu.memory_space<vmem>>, vector<1x1x32xf32>
    %13 = vector.shape_cast %12 : vector<1x1x32xf32> to vector<1x32xf32>
    %c2_18 = arith.constant 2 : index
    %c0_19 = arith.constant 0 : index
    %c0_20 = arith.constant 0 : index
    %14 = vector.load %arg3[%c2_18, %c0_19, %c0_20] : memref<3x1x32xf32, #tpu.memory_space<vmem>>, vector<1x1x32xf32>
    %15 = vector.shape_cast %14 : vector<1x1x32xf32> to vector<1x32xf32>
    %c0_21 = arith.constant 0 : index
    %c0_22 = arith.constant 0 : index
    %c0_23 = arith.constant 0 : index
    %16 = vector.load %arg0[%c0_21, %c0_22, %c0_23] : memref<8x8x1xf32, #tpu.memory_space<vmem>>, vector<8x8x1xf32>
    %c0_24 = arith.constant 0 : index
    %c0_25 = arith.constant 0 : index
    %c0_26 = arith.constant 0 : index
    %17 = vector.load %arg1[%c0_24, %c0_25, %c0_26] : memref<3x1x32xf32, #tpu.memory_space<vmem>>, vector<1x1x32xf32>
    %18 = vector.shape_cast %17 : vector<1x1x32xf32> to vector<1x32xf32>
    %19 = vector.shape_cast %18 : vector<1x32xf32> to vector<1x1x32xf32>
    %20 = vector.broadcast %16 : vector<8x8x1xf32> to vector<8x8x32xf32>
    %21 = vector.broadcast %19 : vector<1x1x32xf32> to vector<8x8x32xf32>
    %22 = arith.mulf %20, %21 : vector<8x8x32xf32>
    %c0_27 = arith.constant 0 : index
    %c0_28 = arith.constant 0 : index
    %c0_29 = arith.constant 0 : index
    %23 = vector.load %arg2[%c0_27, %c0_28, %c0_29] : memref<3x1x32xf32, #tpu.memory_space<vmem>>, vector<1x1x32xf32>
    %24 = vector.shape_cast %23 : vector<1x1x32xf32> to vector<1x32xf32>
    %25 = vector.shape_cast %24 : vector<1x32xf32> to vector<1x1x32xf32>
    %26 = vector.broadcast %25 : vector<1x1x32xf32> to vector<8x8x32xf32>
    %27 = arith.addf %22, %26 : vector<8x8x32xf32>
    %c1_30 = arith.constant 1 : index
    %c0_31 = arith.constant 0 : index
    %c0_32 = arith.constant 0 : index
    %28 = vector.load %arg1[%c1_30, %c0_31, %c0_32] : memref<3x1x32xf32, #tpu.memory_space<vmem>>, vector<1x1x32xf32>
    %29 = vector.shape_cast %28 : vector<1x1x32xf32> to vector<1x32xf32>
    %30 = vector.shape_cast %29 : vector<1x32xf32> to vector<1x1x32xf32>
    %31 = vector.broadcast %16 : vector<8x8x1xf32> to vector<8x8x32xf32>
    %32 = vector.broadcast %30 : vector<1x1x32xf32> to vector<8x8x32xf32>
    %33 = arith.mulf %31, %32 : vector<8x8x32xf32>
    %c1_33 = arith.constant 1 : index
    %c0_34 = arith.constant 0 : index
    %c0_35 = arith.constant 0 : index
    %34 = vector.load %arg2[%c1_33, %c0_34, %c0_35] : memref<3x1x32xf32, #tpu.memory_space<vmem>>, vector<1x1x32xf32>
    %35 = vector.shape_cast %34 : vector<1x1x32xf32> to vector<1x32xf32>
    %36 = vector.shape_cast %35 : vector<1x32xf32> to vector<1x1x32xf32>
    %37 = vector.broadcast %36 : vector<1x1x32xf32> to vector<8x8x32xf32>
    %38 = arith.addf %33, %37 : vector<8x8x32xf32>
    %c2_36 = arith.constant 2 : index
    %c0_37 = arith.constant 0 : index
    %c0_38 = arith.constant 0 : index
    %39 = vector.load %arg1[%c2_36, %c0_37, %c0_38] : memref<3x1x32xf32, #tpu.memory_space<vmem>>, vector<1x1x32xf32>
    %40 = vector.shape_cast %39 : vector<1x1x32xf32> to vector<1x32xf32>
    %41 = vector.shape_cast %40 : vector<1x32xf32> to vector<1x1x32xf32>
    %42 = vector.broadcast %16 : vector<8x8x1xf32> to vector<8x8x32xf32>
    %43 = vector.broadcast %41 : vector<1x1x32xf32> to vector<8x8x32xf32>
    %44 = arith.mulf %42, %43 : vector<8x8x32xf32>
    %c2_39 = arith.constant 2 : index
    %c0_40 = arith.constant 0 : index
    %c0_41 = arith.constant 0 : index
    %45 = vector.load %arg2[%c2_39, %c0_40, %c0_41] : memref<3x1x32xf32, #tpu.memory_space<vmem>>, vector<1x1x32xf32>
    %46 = vector.shape_cast %45 : vector<1x1x32xf32> to vector<1x32xf32>
    %47 = vector.shape_cast %46 : vector<1x32xf32> to vector<1x1x32xf32>
    %48 = vector.broadcast %47 : vector<1x1x32xf32> to vector<8x8x32xf32>
    %49 = arith.addf %44, %48 : vector<8x8x32xf32>
    %cst = arith.constant 0.000000e+00 : f32
    %50 = vector.broadcast %cst : f32 to vector<8x32xf32>
    %cst_42 = arith.constant 0.000000e+00 : f32
    %51 = vector.broadcast %cst_42 : f32 to vector<8x32xf32>
    %cst_43 = arith.constant 0.000000e+00 : f32
    %52 = vector.broadcast %cst_43 : f32 to vector<8x32xf32>
    %cst_44 = arith.constant dense<0.000000e+00> : vector<8x32xf32>
    %53 = tpu.matmul %50, %1, %cst_44 {dimension_numbers = #tpu.dot_dimension_numbers<[1], [0], [0], [1], [0, 0, 1, 1], [], []>} : vector<8x32xf32>, vector<32x32xf32>, vector<8x32xf32> -> vector<8x32xf32>
    %54 = vector.extract_strided_slice %27 {offsets = [0, 0, 0], sizes = [1, 8, 32], strides = [1, 1, 1]} : vector<8x8x32xf32> to vector<1x8x32xf32>
    %55 = vector.shape_cast %54 : vector<1x8x32xf32> to vector<8x32xf32>
    %56 = arith.addf %53, %55 : vector<8x32xf32>
    %57 = vector.broadcast %11 : vector<1x32xf32> to vector<8x32xf32>
    %58 = arith.mulf %57, %50 : vector<8x32xf32>
    %59 = arith.addf %56, %58 : vector<8x32xf32>
    %cst_45 = arith.constant 0.000000e+00 : f32
    %60 = vector.broadcast %cst_45 : f32 to vector<8x32xf32>
    %61 = arith.cmpf oge, %59, %60 : vector<8x32xf32>
    %cst_46 = arith.constant 0.00999999977 : f32
    %62 = vector.broadcast %cst_46 : f32 to vector<8x32xf32>
    %63 = arith.mulf %62, %59 : vector<8x32xf32>
    %64 = arith.select %61, %59, %63 : vector<8x32xi1>, vector<8x32xf32>
    %cst_47 = arith.constant dense<0.000000e+00> : vector<8x32xf32>
    %65 = tpu.matmul %51, %3, %cst_47 {dimension_numbers = #tpu.dot_dimension_numbers<[1], [0], [0], [1], [0, 0, 1, 1], [], []>} : vector<8x32xf32>, vector<32x32xf32>, vector<8x32xf32> -> vector<8x32xf32>
    %66 = vector.extract_strided_slice %38 {offsets = [0, 0, 0], sizes = [1, 8, 32], strides = [1, 1, 1]} : vector<8x8x32xf32> to vector<1x8x32xf32>
    %67 = vector.shape_cast %66 : vector<1x8x32xf32> to vector<8x32xf32>
    %68 = arith.addf %65, %67 : vector<8x32xf32>
    %69 = vector.broadcast %13 : vector<1x32xf32> to vector<8x32xf32>
    %70 = arith.mulf %69, %51 : vector<8x32xf32>
    %71 = arith.addf %68, %70 : vector<8x32xf32>
    %cst_48 = arith.constant dense<0.000000e+00> : vector<8x32xf32>
    %72 = tpu.matmul %64, %7, %cst_48 {dimension_numbers = #tpu.dot_dimension_numbers<[1], [0], [0], [1], [0, 0, 1, 1], [], []>} : vector<8x32xf32>, vector<32x32xf32>, vector<8x32xf32> -> vector<8x32xf32>
    %73 = arith.addf %71, %72 : vector<8x32xf32>
    %cst_49 = arith.constant 0.000000e+00 : f32
    %74 = vector.broadcast %cst_49 : f32 to vector<8x32xf32>
    %75 = arith.cmpf oge, %73, %74 : vector<8x32xf32>
    %cst_50 = arith.constant 0.00999999977 : f32
    %76 = vector.broadcast %cst_50 : f32 to vector<8x32xf32>
    %77 = arith.mulf %76, %73 : vector<8x32xf32>
    %78 = arith.select %75, %73, %77 : vector<8x32xi1>, vector<8x32xf32>
    %cst_51 = arith.constant dense<0.000000e+00> : vector<8x32xf32>
    %79 = tpu.matmul %52, %5, %cst_51 {dimension_numbers = #tpu.dot_dimension_numbers<[1], [0], [0], [1], [0, 0, 1, 1], [], []>} : vector<8x32xf32>, vector<32x32xf32>, vector<8x32xf32> -> vector<8x32xf32>
    %80 = vector.extract_strided_slice %49 {offsets = [0, 0, 0], sizes = [1, 8, 32], strides = [1, 1, 1]} : vector<8x8x32xf32> to vector<1x8x32xf32>
    %81 = vector.shape_cast %80 : vector<1x8x32xf32> to vector<8x32xf32>
    %82 = arith.addf %79, %81 : vector<8x32xf32>
    %83 = vector.broadcast %15 : vector<1x32xf32> to vector<8x32xf32>
    %84 = arith.mulf %83, %52 : vector<8x32xf32>
    %85 = arith.addf %82, %84 : vector<8x32xf32>
    %cst_52 = arith.constant dense<0.000000e+00> : vector<8x32xf32>
    %86 = tpu.matmul %78, %9, %cst_52 {dimension_numbers = #tpu.dot_dimension_numbers<[1], [0], [0], [1], [0, 0, 1, 1], [], []>} : vector<8x32xf32>, vector<32x32xf32>, vector<8x32xf32> -> vector<8x32xf32>
    %87 = arith.addf %85, %86 : vector<8x32xf32>
    %cst_53 = arith.constant 0.000000e+00 : f32
    %88 = vector.broadcast %cst_53 : f32 to vector<8x32xf32>
    %89 = arith.cmpf oge, %87, %88 : vector<8x32xf32>
    %cst_54 = arith.constant 0.00999999977 : f32
    %90 = vector.broadcast %cst_54 : f32 to vector<8x32xf32>
    %91 = arith.mulf %90, %87 : vector<8x32xf32>
    %92 = arith.select %89, %87, %91 : vector<8x32xi1>, vector<8x32xf32>
    %cst_55 = arith.constant dense<0.000000e+00> : vector<8x32xf32>
    %93 = tpu.matmul %64, %1, %cst_55 {dimension_numbers = #tpu.dot_dimension_numbers<[1], [0], [0], [1], [0, 0, 1, 1], [], []>} : vector<8x32xf32>, vector<32x32xf32>, vector<8x32xf32> -> vector<8x32xf32>
    %94 = vector.extract_strided_slice %27 {offsets = [1, 0, 0], sizes = [1, 8, 32], strides = [1, 1, 1]} : vector<8x8x32xf32> to vector<1x8x32xf32>
    %95 = vector.shape_cast %94 : vector<1x8x32xf32> to vector<8x32xf32>
    %96 = arith.addf %93, %95 : vector<8x32xf32>
    %97 = vector.broadcast %11 : vector<1x32xf32> to vector<8x32xf32>
    %98 = arith.mulf %97, %64 : vector<8x32xf32>
    %99 = arith.addf %96, %98 : vector<8x32xf32>
    %cst_56 = arith.constant 0.000000e+00 : f32
    %100 = vector.broadcast %cst_56 : f32 to vector<8x32xf32>
    %101 = arith.cmpf oge, %99, %100 : vector<8x32xf32>
    %cst_57 = arith.constant 0.00999999977 : f32
    %102 = vector.broadcast %cst_57 : f32 to vector<8x32xf32>
    %103 = arith.mulf %102, %99 : vector<8x32xf32>
    %104 = arith.select %101, %99, %103 : vector<8x32xi1>, vector<8x32xf32>
    %cst_58 = arith.constant dense<0.000000e+00> : vector<8x32xf32>
    %105 = tpu.matmul %78, %3, %cst_58 {dimension_numbers = #tpu.dot_dimension_numbers<[1], [0], [0], [1], [0, 0, 1, 1], [], []>} : vector<8x32xf32>, vector<32x32xf32>, vector<8x32xf32> -> vector<8x32xf32>
    %106 = vector.extract_strided_slice %38 {offsets = [1, 0, 0], sizes = [1, 8, 32], strides = [1, 1, 1]} : vector<8x8x32xf32> to vector<1x8x32xf32>
    %107 = vector.shape_cast %106 : vector<1x8x32xf32> to vector<8x32xf32>
    %108 = arith.addf %105, %107 : vector<8x32xf32>
    %109 = vector.broadcast %13 : vector<1x32xf32> to vector<8x32xf32>
    %110 = arith.mulf %109, %78 : vector<8x32xf32>
    %111 = arith.addf %108, %110 : vector<8x32xf32>
    %cst_59 = arith.constant dense<0.000000e+00> : vector<8x32xf32>
    %112 = tpu.matmul %104, %7, %cst_59 {dimension_numbers = #tpu.dot_dimension_numbers<[1], [0], [0], [1], [0, 0, 1, 1], [], []>} : vector<8x32xf32>, vector<32x32xf32>, vector<8x32xf32> -> vector<8x32xf32>
    %113 = arith.addf %111, %112 : vector<8x32xf32>
    %cst_60 = arith.constant 0.000000e+00 : f32
    %114 = vector.broadcast %cst_60 : f32 to vector<8x32xf32>
    %115 = arith.cmpf oge, %113, %114 : vector<8x32xf32>
    %cst_61 = arith.constant 0.00999999977 : f32
    %116 = vector.broadcast %cst_61 : f32 to vector<8x32xf32>
    %117 = arith.mulf %116, %113 : vector<8x32xf32>
    %118 = arith.select %115, %113, %117 : vector<8x32xi1>, vector<8x32xf32>
    %cst_62 = arith.constant dense<0.000000e+00> : vector<8x32xf32>
    %119 = tpu.matmul %92, %5, %cst_62 {dimension_numbers = #tpu.dot_dimension_numbers<[1], [0], [0], [1], [0, 0, 1, 1], [], []>} : vector<8x32xf32>, vector<32x32xf32>, vector<8x32xf32> -> vector<8x32xf32>
    %120 = vector.extract_strided_slice %49 {offsets = [1, 0, 0], sizes = [1, 8, 32], strides = [1, 1, 1]} : vector<8x8x32xf32> to vector<1x8x32xf32>
    %121 = vector.shape_cast %120 : vector<1x8x32xf32> to vector<8x32xf32>
    %122 = arith.addf %119, %121 : vector<8x32xf32>
    %123 = vector.broadcast %15 : vector<1x32xf32> to vector<8x32xf32>
    %124 = arith.mulf %123, %92 : vector<8x32xf32>
    %125 = arith.addf %122, %124 : vector<8x32xf32>
    %cst_63 = arith.constant dense<0.000000e+00> : vector<8x32xf32>
    %126 = tpu.matmul %118, %9, %cst_63 {dimension_numbers = #tpu.dot_dimension_numbers<[1], [0], [0], [1], [0, 0, 1, 1], [], []>} : vector<8x32xf32>, vector<32x32xf32>, vector<8x32xf32> -> vector<8x32xf32>
    %127 = arith.addf %125, %126 : vector<8x32xf32>
    %cst_64 = arith.constant 0.000000e+00 : f32
    %128 = vector.broadcast %cst_64 : f32 to vector<8x32xf32>
    %129 = arith.cmpf oge, %127, %128 : vector<8x32xf32>
    %cst_65 = arith.constant 0.00999999977 : f32
    %130 = vector.broadcast %cst_65 : f32 to vector<8x32xf32>
    %131 = arith.mulf %130, %127 : vector<8x32xf32>
    %132 = arith.select %129, %127, %131 : vector<8x32xi1>, vector<8x32xf32>
    %cst_66 = arith.constant dense<0.000000e+00> : vector<8x32xf32>
    %133 = tpu.matmul %104, %1, %cst_66 {dimension_numbers = #tpu.dot_dimension_numbers<[1], [0], [0], [1], [0, 0, 1, 1], [], []>} : vector<8x32xf32>, vector<32x32xf32>, vector<8x32xf32> -> vector<8x32xf32>
    %134 = vector.extract_strided_slice %27 {offsets = [2, 0, 0], sizes = [1, 8, 32], strides = [1, 1, 1]} : vector<8x8x32xf32> to vector<1x8x32xf32>
    %135 = vector.shape_cast %134 : vector<1x8x32xf32> to vector<8x32xf32>
    %136 = arith.addf %133, %135 : vector<8x32xf32>
    %137 = vector.broadcast %11 : vector<1x32xf32> to vector<8x32xf32>
    %138 = arith.mulf %137, %104 : vector<8x32xf32>
    %139 = arith.addf %136, %138 : vector<8x32xf32>
    %cst_67 = arith.constant 0.000000e+00 : f32
    %140 = vector.broadcast %cst_67 : f32 to vector<8x32xf32>
    %141 = arith.cmpf oge, %139, %140 : vector<8x32xf32>
    %cst_68 = arith.constant 0.00999999977 : f32
    %142 = vector.broadcast %cst_68 : f32 to vector<8x32xf32>
    %143 = arith.mulf %142, %139 : vector<8x32xf32>
    %144 = arith.select %141, %139, %143 : vector<8x32xi1>, vector<8x32xf32>
    %cst_69 = arith.constant dense<0.000000e+00> : vector<8x32xf32>
    %145 = tpu.matmul %118, %3, %cst_69 {dimension_numbers = #tpu.dot_dimension_numbers<[1], [0], [0], [1], [0, 0, 1, 1], [], []>} : vector<8x32xf32>, vector<32x32xf32>, vector<8x32xf32> -> vector<8x32xf32>
    %146 = vector.extract_strided_slice %38 {offsets = [2, 0, 0], sizes = [1, 8, 32], strides = [1, 1, 1]} : vector<8x8x32xf32> to vector<1x8x32xf32>
    %147 = vector.shape_cast %146 : vector<1x8x32xf32> to vector<8x32xf32>
    %148 = arith.addf %145, %147 : vector<8x32xf32>
    %149 = vector.broadcast %13 : vector<1x32xf32> to vector<8x32xf32>
    %150 = arith.mulf %149, %118 : vector<8x32xf32>
    %151 = arith.addf %148, %150 : vector<8x32xf32>
    %cst_70 = arith.constant dense<0.000000e+00> : vector<8x32xf32>
    %152 = tpu.matmul %144, %7, %cst_70 {dimension_numbers = #tpu.dot_dimension_numbers<[1], [0], [0], [1], [0, 0, 1, 1], [], []>} : vector<8x32xf32>, vector<32x32xf32>, vector<8x32xf32> -> vector<8x32xf32>
    %153 = arith.addf %151, %152 : vector<8x32xf32>
    %cst_71 = arith.constant 0.000000e+00 : f32
    %154 = vector.broadcast %cst_71 : f32 to vector<8x32xf32>
    %155 = arith.cmpf oge, %153, %154 : vector<8x32xf32>
    %cst_72 = arith.constant 0.00999999977 : f32
    %156 = vector.broadcast %cst_72 : f32 to vector<8x32xf32>
    %157 = arith.mulf %156, %153 : vector<8x32xf32>
    %158 = arith.select %155, %153, %157 : vector<8x32xi1>, vector<8x32xf32>
    %cst_73 = arith.constant dense<0.000000e+00> : vector<8x32xf32>
    %159 = tpu.matmul %132, %5, %cst_73 {dimension_numbers = #tpu.dot_dimension_numbers<[1], [0], [0], [1], [0, 0, 1, 1], [], []>} : vector<8x32xf32>, vector<32x32xf32>, vector<8x32xf32> -> vector<8x32xf32>
    %160 = vector.extract_strided_slice %49 {offsets = [2, 0, 0], sizes = [1, 8, 32], strides = [1, 1, 1]} : vector<8x8x32xf32> to vector<1x8x32xf32>
    %161 = vector.shape_cast %160 : vector<1x8x32xf32> to vector<8x32xf32>
    %162 = arith.addf %159, %161 : vector<8x32xf32>
    %163 = vector.broadcast %15 : vector<1x32xf32> to vector<8x32xf32>
    %164 = arith.mulf %163, %132 : vector<8x32xf32>
    %165 = arith.addf %162, %164 : vector<8x32xf32>
    %cst_74 = arith.constant dense<0.000000e+00> : vector<8x32xf32>
    %166 = tpu.matmul %158, %9, %cst_74 {dimension_numbers = #tpu.dot_dimension_numbers<[1], [0], [0], [1], [0, 0, 1, 1], [], []>} : vector<8x32xf32>, vector<32x32xf32>, vector<8x32xf32> -> vector<8x32xf32>
    %167 = arith.addf %165, %166 : vector<8x32xf32>
    %cst_75 = arith.constant 0.000000e+00 : f32
    %168 = vector.broadcast %cst_75 : f32 to vector<8x32xf32>
    %169 = arith.cmpf oge, %167, %168 : vector<8x32xf32>
    %cst_76 = arith.constant 0.00999999977 : f32
    %170 = vector.broadcast %cst_76 : f32 to vector<8x32xf32>
    %171 = arith.mulf %170, %167 : vector<8x32xf32>
    %172 = arith.select %169, %167, %171 : vector<8x32xi1>, vector<8x32xf32>
    %cst_77 = arith.constant dense<0.000000e+00> : vector<8x32xf32>
    %173 = tpu.matmul %144, %1, %cst_77 {dimension_numbers = #tpu.dot_dimension_numbers<[1], [0], [0], [1], [0, 0, 1, 1], [], []>} : vector<8x32xf32>, vector<32x32xf32>, vector<8x32xf32> -> vector<8x32xf32>
    %174 = vector.extract_strided_slice %27 {offsets = [3, 0, 0], sizes = [1, 8, 32], strides = [1, 1, 1]} : vector<8x8x32xf32> to vector<1x8x32xf32>
    %175 = vector.shape_cast %174 : vector<1x8x32xf32> to vector<8x32xf32>
    %176 = arith.addf %173, %175 : vector<8x32xf32>
    %177 = vector.broadcast %11 : vector<1x32xf32> to vector<8x32xf32>
    %178 = arith.mulf %177, %144 : vector<8x32xf32>
    %179 = arith.addf %176, %178 : vector<8x32xf32>
    %cst_78 = arith.constant 0.000000e+00 : f32
    %180 = vector.broadcast %cst_78 : f32 to vector<8x32xf32>
    %181 = arith.cmpf oge, %179, %180 : vector<8x32xf32>
    %cst_79 = arith.constant 0.00999999977 : f32
    %182 = vector.broadcast %cst_79 : f32 to vector<8x32xf32>
    %183 = arith.mulf %182, %179 : vector<8x32xf32>
    %184 = arith.select %181, %179, %183 : vector<8x32xi1>, vector<8x32xf32>
    %cst_80 = arith.constant dense<0.000000e+00> : vector<8x32xf32>
    %185 = tpu.matmul %158, %3, %cst_80 {dimension_numbers = #tpu.dot_dimension_numbers<[1], [0], [0], [1], [0, 0, 1, 1], [], []>} : vector<8x32xf32>, vector<32x32xf32>, vector<8x32xf32> -> vector<8x32xf32>
    %186 = vector.extract_strided_slice %38 {offsets = [3, 0, 0], sizes = [1, 8, 32], strides = [1, 1, 1]} : vector<8x8x32xf32> to vector<1x8x32xf32>
    %187 = vector.shape_cast %186 : vector<1x8x32xf32> to vector<8x32xf32>
    %188 = arith.addf %185, %187 : vector<8x32xf32>
    %189 = vector.broadcast %13 : vector<1x32xf32> to vector<8x32xf32>
    %190 = arith.mulf %189, %158 : vector<8x32xf32>
    %191 = arith.addf %188, %190 : vector<8x32xf32>
    %cst_81 = arith.constant dense<0.000000e+00> : vector<8x32xf32>
    %192 = tpu.matmul %184, %7, %cst_81 {dimension_numbers = #tpu.dot_dimension_numbers<[1], [0], [0], [1], [0, 0, 1, 1], [], []>} : vector<8x32xf32>, vector<32x32xf32>, vector<8x32xf32> -> vector<8x32xf32>
    %193 = arith.addf %191, %192 : vector<8x32xf32>
    %cst_82 = arith.constant 0.000000e+00 : f32
    %194 = vector.broadcast %cst_82 : f32 to vector<8x32xf32>
    %195 = arith.cmpf oge, %193, %194 : vector<8x32xf32>
    %cst_83 = arith.constant 0.00999999977 : f32
    %196 = vector.broadcast %cst_83 : f32 to vector<8x32xf32>
    %197 = arith.mulf %196, %193 : vector<8x32xf32>
    %198 = arith.select %195, %193, %197 : vector<8x32xi1>, vector<8x32xf32>
    %cst_84 = arith.constant dense<0.000000e+00> : vector<8x32xf32>
    %199 = tpu.matmul %172, %5, %cst_84 {dimension_numbers = #tpu.dot_dimension_numbers<[1], [0], [0], [1], [0, 0, 1, 1], [], []>} : vector<8x32xf32>, vector<32x32xf32>, vector<8x32xf32> -> vector<8x32xf32>
    %200 = vector.extract_strided_slice %49 {offsets = [3, 0, 0], sizes = [1, 8, 32], strides = [1, 1, 1]} : vector<8x8x32xf32> to vector<1x8x32xf32>
    %201 = vector.shape_cast %200 : vector<1x8x32xf32> to vector<8x32xf32>
    %202 = arith.addf %199, %201 : vector<8x32xf32>
    %203 = vector.broadcast %15 : vector<1x32xf32> to vector<8x32xf32>
    %204 = arith.mulf %203, %172 : vector<8x32xf32>
    %205 = arith.addf %202, %204 : vector<8x32xf32>
    %cst_85 = arith.constant dense<0.000000e+00> : vector<8x32xf32>
    %206 = tpu.matmul %198, %9, %cst_85 {dimension_numbers = #tpu.dot_dimension_numbers<[1], [0], [0], [1], [0, 0, 1, 1], [], []>} : vector<8x32xf32>, vector<32x32xf32>, vector<8x32xf32> -> vector<8x32xf32>
    %207 = arith.addf %205, %206 : vector<8x32xf32>
    %cst_86 = arith.constant 0.000000e+00 : f32
    %208 = vector.broadcast %cst_86 : f32 to vector<8x32xf32>
    %209 = arith.cmpf oge, %207, %208 : vector<8x32xf32>
    %cst_87 = arith.constant 0.00999999977 : f32
    %210 = vector.broadcast %cst_87 : f32 to vector<8x32xf32>
    %211 = arith.mulf %210, %207 : vector<8x32xf32>
    %212 = arith.select %209, %207, %211 : vector<8x32xi1>, vector<8x32xf32>
    %cst_88 = arith.constant dense<0.000000e+00> : vector<8x32xf32>
    %213 = tpu.matmul %184, %1, %cst_88 {dimension_numbers = #tpu.dot_dimension_numbers<[1], [0], [0], [1], [0, 0, 1, 1], [], []>} : vector<8x32xf32>, vector<32x32xf32>, vector<8x32xf32> -> vector<8x32xf32>
    %214 = vector.extract_strided_slice %27 {offsets = [4, 0, 0], sizes = [1, 8, 32], strides = [1, 1, 1]} : vector<8x8x32xf32> to vector<1x8x32xf32>
    %215 = vector.shape_cast %214 : vector<1x8x32xf32> to vector<8x32xf32>
    %216 = arith.addf %213, %215 : vector<8x32xf32>
    %217 = vector.broadcast %11 : vector<1x32xf32> to vector<8x32xf32>
    %218 = arith.mulf %217, %184 : vector<8x32xf32>
    %219 = arith.addf %216, %218 : vector<8x32xf32>
    %cst_89 = arith.constant 0.000000e+00 : f32
    %220 = vector.broadcast %cst_89 : f32 to vector<8x32xf32>
    %221 = arith.cmpf oge, %219, %220 : vector<8x32xf32>
    %cst_90 = arith.constant 0.00999999977 : f32
    %222 = vector.broadcast %cst_90 : f32 to vector<8x32xf32>
    %223 = arith.mulf %222, %219 : vector<8x32xf32>
    %224 = arith.select %221, %219, %223 : vector<8x32xi1>, vector<8x32xf32>
    %cst_91 = arith.constant dense<0.000000e+00> : vector<8x32xf32>
    %225 = tpu.matmul %198, %3, %cst_91 {dimension_numbers = #tpu.dot_dimension_numbers<[1], [0], [0], [1], [0, 0, 1, 1], [], []>} : vector<8x32xf32>, vector<32x32xf32>, vector<8x32xf32> -> vector<8x32xf32>
    %226 = vector.extract_strided_slice %38 {offsets = [4, 0, 0], sizes = [1, 8, 32], strides = [1, 1, 1]} : vector<8x8x32xf32> to vector<1x8x32xf32>
    %227 = vector.shape_cast %226 : vector<1x8x32xf32> to vector<8x32xf32>
    %228 = arith.addf %225, %227 : vector<8x32xf32>
    %229 = vector.broadcast %13 : vector<1x32xf32> to vector<8x32xf32>
    %230 = arith.mulf %229, %198 : vector<8x32xf32>
    %231 = arith.addf %228, %230 : vector<8x32xf32>
    %cst_92 = arith.constant dense<0.000000e+00> : vector<8x32xf32>
    %232 = tpu.matmul %224, %7, %cst_92 {dimension_numbers = #tpu.dot_dimension_numbers<[1], [0], [0], [1], [0, 0, 1, 1], [], []>} : vector<8x32xf32>, vector<32x32xf32>, vector<8x32xf32> -> vector<8x32xf32>
    %233 = arith.addf %231, %232 : vector<8x32xf32>
    %cst_93 = arith.constant 0.000000e+00 : f32
    %234 = vector.broadcast %cst_93 : f32 to vector<8x32xf32>
    %235 = arith.cmpf oge, %233, %234 : vector<8x32xf32>
    %cst_94 = arith.constant 0.00999999977 : f32
    %236 = vector.broadcast %cst_94 : f32 to vector<8x32xf32>
    %237 = arith.mulf %236, %233 : vector<8x32xf32>
    %238 = arith.select %235, %233, %237 : vector<8x32xi1>, vector<8x32xf32>
    %cst_95 = arith.constant dense<0.000000e+00> : vector<8x32xf32>
    %239 = tpu.matmul %212, %5, %cst_95 {dimension_numbers = #tpu.dot_dimension_numbers<[1], [0], [0], [1], [0, 0, 1, 1], [], []>} : vector<8x32xf32>, vector<32x32xf32>, vector<8x32xf32> -> vector<8x32xf32>
    %240 = vector.extract_strided_slice %49 {offsets = [4, 0, 0], sizes = [1, 8, 32], strides = [1, 1, 1]} : vector<8x8x32xf32> to vector<1x8x32xf32>
    %241 = vector.shape_cast %240 : vector<1x8x32xf32> to vector<8x32xf32>
    %242 = arith.addf %239, %241 : vector<8x32xf32>
    %243 = vector.broadcast %15 : vector<1x32xf32> to vector<8x32xf32>
    %244 = arith.mulf %243, %212 : vector<8x32xf32>
    %245 = arith.addf %242, %244 : vector<8x32xf32>
    %cst_96 = arith.constant dense<0.000000e+00> : vector<8x32xf32>
    %246 = tpu.matmul %238, %9, %cst_96 {dimension_numbers = #tpu.dot_dimension_numbers<[1], [0], [0], [1], [0, 0, 1, 1], [], []>} : vector<8x32xf32>, vector<32x32xf32>, vector<8x32xf32> -> vector<8x32xf32>
    %247 = arith.addf %245, %246 : vector<8x32xf32>
    %cst_97 = arith.constant 0.000000e+00 : f32
    %248 = vector.broadcast %cst_97 : f32 to vector<8x32xf32>
    %249 = arith.cmpf oge, %247, %248 : vector<8x32xf32>
    %cst_98 = arith.constant 0.00999999977 : f32
    %250 = vector.broadcast %cst_98 : f32 to vector<8x32xf32>
    %251 = arith.mulf %250, %247 : vector<8x32xf32>
    %252 = arith.select %249, %247, %251 : vector<8x32xi1>, vector<8x32xf32>
    %cst_99 = arith.constant dense<0.000000e+00> : vector<8x32xf32>
    %253 = tpu.matmul %224, %1, %cst_99 {dimension_numbers = #tpu.dot_dimension_numbers<[1], [0], [0], [1], [0, 0, 1, 1], [], []>} : vector<8x32xf32>, vector<32x32xf32>, vector<8x32xf32> -> vector<8x32xf32>
    %254 = vector.extract_strided_slice %27 {offsets = [5, 0, 0], sizes = [1, 8, 32], strides = [1, 1, 1]} : vector<8x8x32xf32> to vector<1x8x32xf32>
    %255 = vector.shape_cast %254 : vector<1x8x32xf32> to vector<8x32xf32>
    %256 = arith.addf %253, %255 : vector<8x32xf32>
    %257 = vector.broadcast %11 : vector<1x32xf32> to vector<8x32xf32>
    %258 = arith.mulf %257, %224 : vector<8x32xf32>
    %259 = arith.addf %256, %258 : vector<8x32xf32>
    %cst_100 = arith.constant 0.000000e+00 : f32
    %260 = vector.broadcast %cst_100 : f32 to vector<8x32xf32>
    %261 = arith.cmpf oge, %259, %260 : vector<8x32xf32>
    %cst_101 = arith.constant 0.00999999977 : f32
    %262 = vector.broadcast %cst_101 : f32 to vector<8x32xf32>
    %263 = arith.mulf %262, %259 : vector<8x32xf32>
    %264 = arith.select %261, %259, %263 : vector<8x32xi1>, vector<8x32xf32>
    %cst_102 = arith.constant dense<0.000000e+00> : vector<8x32xf32>
    %265 = tpu.matmul %238, %3, %cst_102 {dimension_numbers = #tpu.dot_dimension_numbers<[1], [0], [0], [1], [0, 0, 1, 1], [], []>} : vector<8x32xf32>, vector<32x32xf32>, vector<8x32xf32> -> vector<8x32xf32>
    %266 = vector.extract_strided_slice %38 {offsets = [5, 0, 0], sizes = [1, 8, 32], strides = [1, 1, 1]} : vector<8x8x32xf32> to vector<1x8x32xf32>
    %267 = vector.shape_cast %266 : vector<1x8x32xf32> to vector<8x32xf32>
    %268 = arith.addf %265, %267 : vector<8x32xf32>
    %269 = vector.broadcast %13 : vector<1x32xf32> to vector<8x32xf32>
    %270 = arith.mulf %269, %238 : vector<8x32xf32>
    %271 = arith.addf %268, %270 : vector<8x32xf32>
    %cst_103 = arith.constant dense<0.000000e+00> : vector<8x32xf32>
    %272 = tpu.matmul %264, %7, %cst_103 {dimension_numbers = #tpu.dot_dimension_numbers<[1], [0], [0], [1], [0, 0, 1, 1], [], []>} : vector<8x32xf32>, vector<32x32xf32>, vector<8x32xf32> -> vector<8x32xf32>
    %273 = arith.addf %271, %272 : vector<8x32xf32>
    %cst_104 = arith.constant 0.000000e+00 : f32
    %274 = vector.broadcast %cst_104 : f32 to vector<8x32xf32>
    %275 = arith.cmpf oge, %273, %274 : vector<8x32xf32>
    %cst_105 = arith.constant 0.00999999977 : f32
    %276 = vector.broadcast %cst_105 : f32 to vector<8x32xf32>
    %277 = arith.mulf %276, %273 : vector<8x32xf32>
    %278 = arith.select %275, %273, %277 : vector<8x32xi1>, vector<8x32xf32>
    %cst_106 = arith.constant dense<0.000000e+00> : vector<8x32xf32>
    %279 = tpu.matmul %252, %5, %cst_106 {dimension_numbers = #tpu.dot_dimension_numbers<[1], [0], [0], [1], [0, 0, 1, 1], [], []>} : vector<8x32xf32>, vector<32x32xf32>, vector<8x32xf32> -> vector<8x32xf32>
    %280 = vector.extract_strided_slice %49 {offsets = [5, 0, 0], sizes = [1, 8, 32], strides = [1, 1, 1]} : vector<8x8x32xf32> to vector<1x8x32xf32>
    %281 = vector.shape_cast %280 : vector<1x8x32xf32> to vector<8x32xf32>
    %282 = arith.addf %279, %281 : vector<8x32xf32>
    %283 = vector.broadcast %15 : vector<1x32xf32> to vector<8x32xf32>
    %284 = arith.mulf %283, %252 : vector<8x32xf32>
    %285 = arith.addf %282, %284 : vector<8x32xf32>
    %cst_107 = arith.constant dense<0.000000e+00> : vector<8x32xf32>
    %286 = tpu.matmul %278, %9, %cst_107 {dimension_numbers = #tpu.dot_dimension_numbers<[1], [0], [0], [1], [0, 0, 1, 1], [], []>} : vector<8x32xf32>, vector<32x32xf32>, vector<8x32xf32> -> vector<8x32xf32>
    %287 = arith.addf %285, %286 : vector<8x32xf32>
    %cst_108 = arith.constant 0.000000e+00 : f32
    %288 = vector.broadcast %cst_108 : f32 to vector<8x32xf32>
    %289 = arith.cmpf oge, %287, %288 : vector<8x32xf32>
    %cst_109 = arith.constant 0.00999999977 : f32
    %290 = vector.broadcast %cst_109 : f32 to vector<8x32xf32>
    %291 = arith.mulf %290, %287 : vector<8x32xf32>
    %292 = arith.select %289, %287, %291 : vector<8x32xi1>, vector<8x32xf32>
    %cst_110 = arith.constant dense<0.000000e+00> : vector<8x32xf32>
    %293 = tpu.matmul %264, %1, %cst_110 {dimension_numbers = #tpu.dot_dimension_numbers<[1], [0], [0], [1], [0, 0, 1, 1], [], []>} : vector<8x32xf32>, vector<32x32xf32>, vector<8x32xf32> -> vector<8x32xf32>
    %294 = vector.extract_strided_slice %27 {offsets = [6, 0, 0], sizes = [1, 8, 32], strides = [1, 1, 1]} : vector<8x8x32xf32> to vector<1x8x32xf32>
    %295 = vector.shape_cast %294 : vector<1x8x32xf32> to vector<8x32xf32>
    %296 = arith.addf %293, %295 : vector<8x32xf32>
    %297 = vector.broadcast %11 : vector<1x32xf32> to vector<8x32xf32>
    %298 = arith.mulf %297, %264 : vector<8x32xf32>
    %299 = arith.addf %296, %298 : vector<8x32xf32>
    %cst_111 = arith.constant 0.000000e+00 : f32
    %300 = vector.broadcast %cst_111 : f32 to vector<8x32xf32>
    %301 = arith.cmpf oge, %299, %300 : vector<8x32xf32>
    %cst_112 = arith.constant 0.00999999977 : f32
    %302 = vector.broadcast %cst_112 : f32 to vector<8x32xf32>
    %303 = arith.mulf %302, %299 : vector<8x32xf32>
    %304 = arith.select %301, %299, %303 : vector<8x32xi1>, vector<8x32xf32>
    %cst_113 = arith.constant dense<0.000000e+00> : vector<8x32xf32>
    %305 = tpu.matmul %278, %3, %cst_113 {dimension_numbers = #tpu.dot_dimension_numbers<[1], [0], [0], [1], [0, 0, 1, 1], [], []>} : vector<8x32xf32>, vector<32x32xf32>, vector<8x32xf32> -> vector<8x32xf32>
    %306 = vector.extract_strided_slice %38 {offsets = [6, 0, 0], sizes = [1, 8, 32], strides = [1, 1, 1]} : vector<8x8x32xf32> to vector<1x8x32xf32>
    %307 = vector.shape_cast %306 : vector<1x8x32xf32> to vector<8x32xf32>
    %308 = arith.addf %305, %307 : vector<8x32xf32>
    %309 = vector.broadcast %13 : vector<1x32xf32> to vector<8x32xf32>
    %310 = arith.mulf %309, %278 : vector<8x32xf32>
    %311 = arith.addf %308, %310 : vector<8x32xf32>
    %cst_114 = arith.constant dense<0.000000e+00> : vector<8x32xf32>
    %312 = tpu.matmul %304, %7, %cst_114 {dimension_numbers = #tpu.dot_dimension_numbers<[1], [0], [0], [1], [0, 0, 1, 1], [], []>} : vector<8x32xf32>, vector<32x32xf32>, vector<8x32xf32> -> vector<8x32xf32>
    %313 = arith.addf %311, %312 : vector<8x32xf32>
    %cst_115 = arith.constant 0.000000e+00 : f32
    %314 = vector.broadcast %cst_115 : f32 to vector<8x32xf32>
    %315 = arith.cmpf oge, %313, %314 : vector<8x32xf32>
    %cst_116 = arith.constant 0.00999999977 : f32
    %316 = vector.broadcast %cst_116 : f32 to vector<8x32xf32>
    %317 = arith.mulf %316, %313 : vector<8x32xf32>
    %318 = arith.select %315, %313, %317 : vector<8x32xi1>, vector<8x32xf32>
    %cst_117 = arith.constant dense<0.000000e+00> : vector<8x32xf32>
    %319 = tpu.matmul %292, %5, %cst_117 {dimension_numbers = #tpu.dot_dimension_numbers<[1], [0], [0], [1], [0, 0, 1, 1], [], []>} : vector<8x32xf32>, vector<32x32xf32>, vector<8x32xf32> -> vector<8x32xf32>
    %320 = vector.extract_strided_slice %49 {offsets = [6, 0, 0], sizes = [1, 8, 32], strides = [1, 1, 1]} : vector<8x8x32xf32> to vector<1x8x32xf32>
    %321 = vector.shape_cast %320 : vector<1x8x32xf32> to vector<8x32xf32>
    %322 = arith.addf %319, %321 : vector<8x32xf32>
    %323 = vector.broadcast %15 : vector<1x32xf32> to vector<8x32xf32>
    %324 = arith.mulf %323, %292 : vector<8x32xf32>
    %325 = arith.addf %322, %324 : vector<8x32xf32>
    %cst_118 = arith.constant dense<0.000000e+00> : vector<8x32xf32>
    %326 = tpu.matmul %318, %9, %cst_118 {dimension_numbers = #tpu.dot_dimension_numbers<[1], [0], [0], [1], [0, 0, 1, 1], [], []>} : vector<8x32xf32>, vector<32x32xf32>, vector<8x32xf32> -> vector<8x32xf32>
    %327 = arith.addf %325, %326 : vector<8x32xf32>
    %cst_119 = arith.constant 0.000000e+00 : f32
    %328 = vector.broadcast %cst_119 : f32 to vector<8x32xf32>
    %329 = arith.cmpf oge, %327, %328 : vector<8x32xf32>
    %cst_120 = arith.constant 0.00999999977 : f32
    %330 = vector.broadcast %cst_120 : f32 to vector<8x32xf32>
    %331 = arith.mulf %330, %327 : vector<8x32xf32>
    %332 = arith.select %329, %327, %331 : vector<8x32xi1>, vector<8x32xf32>
    %cst_121 = arith.constant dense<0.000000e+00> : vector<8x32xf32>
    %333 = tpu.matmul %304, %1, %cst_121 {dimension_numbers = #tpu.dot_dimension_numbers<[1], [0], [0], [1], [0, 0, 1, 1], [], []>} : vector<8x32xf32>, vector<32x32xf32>, vector<8x32xf32> -> vector<8x32xf32>
    %334 = vector.extract_strided_slice %27 {offsets = [7, 0, 0], sizes = [1, 8, 32], strides = [1, 1, 1]} : vector<8x8x32xf32> to vector<1x8x32xf32>
    %335 = vector.shape_cast %334 : vector<1x8x32xf32> to vector<8x32xf32>
    %336 = arith.addf %333, %335 : vector<8x32xf32>
    %337 = vector.broadcast %11 : vector<1x32xf32> to vector<8x32xf32>
    %338 = arith.mulf %337, %304 : vector<8x32xf32>
    %339 = arith.addf %336, %338 : vector<8x32xf32>
    %cst_122 = arith.constant 0.000000e+00 : f32
    %340 = vector.broadcast %cst_122 : f32 to vector<8x32xf32>
    %341 = arith.cmpf oge, %339, %340 : vector<8x32xf32>
    %cst_123 = arith.constant 0.00999999977 : f32
    %342 = vector.broadcast %cst_123 : f32 to vector<8x32xf32>
    %343 = arith.mulf %342, %339 : vector<8x32xf32>
    %344 = arith.select %341, %339, %343 : vector<8x32xi1>, vector<8x32xf32>
    %cst_124 = arith.constant dense<0.000000e+00> : vector<8x32xf32>
    %345 = tpu.matmul %318, %3, %cst_124 {dimension_numbers = #tpu.dot_dimension_numbers<[1], [0], [0], [1], [0, 0, 1, 1], [], []>} : vector<8x32xf32>, vector<32x32xf32>, vector<8x32xf32> -> vector<8x32xf32>
    %346 = vector.extract_strided_slice %38 {offsets = [7, 0, 0], sizes = [1, 8, 32], strides = [1, 1, 1]} : vector<8x8x32xf32> to vector<1x8x32xf32>
    %347 = vector.shape_cast %346 : vector<1x8x32xf32> to vector<8x32xf32>
    %348 = arith.addf %345, %347 : vector<8x32xf32>
    %349 = vector.broadcast %13 : vector<1x32xf32> to vector<8x32xf32>
    %350 = arith.mulf %349, %318 : vector<8x32xf32>
    %351 = arith.addf %348, %350 : vector<8x32xf32>
    %cst_125 = arith.constant dense<0.000000e+00> : vector<8x32xf32>
    %352 = tpu.matmul %344, %7, %cst_125 {dimension_numbers = #tpu.dot_dimension_numbers<[1], [0], [0], [1], [0, 0, 1, 1], [], []>} : vector<8x32xf32>, vector<32x32xf32>, vector<8x32xf32> -> vector<8x32xf32>
    %353 = arith.addf %351, %352 : vector<8x32xf32>
    %cst_126 = arith.constant 0.000000e+00 : f32
    %354 = vector.broadcast %cst_126 : f32 to vector<8x32xf32>
    %355 = arith.cmpf oge, %353, %354 : vector<8x32xf32>
    %cst_127 = arith.constant 0.00999999977 : f32
    %356 = vector.broadcast %cst_127 : f32 to vector<8x32xf32>
    %357 = arith.mulf %356, %353 : vector<8x32xf32>
    %358 = arith.select %355, %353, %357 : vector<8x32xi1>, vector<8x32xf32>
    %cst_128 = arith.constant dense<0.000000e+00> : vector<8x32xf32>
    %359 = tpu.matmul %332, %5, %cst_128 {dimension_numbers = #tpu.dot_dimension_numbers<[1], [0], [0], [1], [0, 0, 1, 1], [], []>} : vector<8x32xf32>, vector<32x32xf32>, vector<8x32xf32> -> vector<8x32xf32>
    %360 = vector.extract_strided_slice %49 {offsets = [7, 0, 0], sizes = [1, 8, 32], strides = [1, 1, 1]} : vector<8x8x32xf32> to vector<1x8x32xf32>
    %361 = vector.shape_cast %360 : vector<1x8x32xf32> to vector<8x32xf32>
    %362 = arith.addf %359, %361 : vector<8x32xf32>
    %363 = vector.broadcast %15 : vector<1x32xf32> to vector<8x32xf32>
    %364 = arith.mulf %363, %332 : vector<8x32xf32>
    %365 = arith.addf %362, %364 : vector<8x32xf32>
    %cst_129 = arith.constant dense<0.000000e+00> : vector<8x32xf32>
    %366 = tpu.matmul %358, %9, %cst_129 {dimension_numbers = #tpu.dot_dimension_numbers<[1], [0], [0], [1], [0, 0, 1, 1], [], []>} : vector<8x32xf32>, vector<32x32xf32>, vector<8x32xf32> -> vector<8x32xf32>
    %367 = arith.addf %365, %366 : vector<8x32xf32>
    %cst_130 = arith.constant 0.000000e+00 : f32
    %368 = vector.broadcast %cst_130 : f32 to vector<8x32xf32>
    %369 = arith.cmpf oge, %367, %368 : vector<8x32xf32>
    %cst_131 = arith.constant 0.00999999977 : f32
    %370 = vector.broadcast %cst_131 : f32 to vector<8x32xf32>
    %371 = arith.mulf %370, %367 : vector<8x32xf32>
    %372 = arith.select %369, %367, %371 : vector<8x32xi1>, vector<8x32xf32>
    %c0_132 = arith.constant 0 : index
    %c0_133 = arith.constant 0 : index
    %373 = vector.load %arg6[%c0_132, %c0_133] : memref<32x32xf32, #tpu.memory_space<vmem>>, vector<32x32xf32>
    %cst_134 = arith.constant dense<0.000000e+00> : vector<8x32xf32>
    %374 = tpu.matmul %372, %373, %cst_134 {dimension_numbers = #tpu.dot_dimension_numbers<[1], [0], [0], [1], [0, 0, 1, 1], [], []>} : vector<8x32xf32>, vector<32x32xf32>, vector<8x32xf32> -> vector<8x32xf32>
    %c0_135 = arith.constant 0 : index
    %c0_136 = arith.constant 0 : index
    %375 = vector.load %arg7[%c0_135, %c0_136] : memref<1x32xf32, #tpu.memory_space<vmem>>, vector<1x32xf32>
    %376 = vector.broadcast %375 : vector<1x32xf32> to vector<8x32xf32>
    %377 = arith.addf %374, %376 : vector<8x32xf32>
    %378 = tpu.concatenate %344, %358, %372, %377 in 1 : vector<8x32xf32>, vector<8x32xf32>, vector<8x32xf32>, vector<8x32xf32> -> vector<8x128xf32>
    %c0_137 = arith.constant 0 : index
    %c0_138 = arith.constant 0 : index
    %379 = vector.load %arg8[%c0_137, %c0_138] : memref<8x128xf32, #tpu.memory_space<vmem>>, vector<8x128xf32>
    tpu.vector_store %arg8[%c0_137, %c0_138], %378 {strides = array<i32>} : memref<8x128xf32, #tpu.memory_space<vmem>>, vector<8x128xf32>,
    return
  }
}

</mosaic_0001>

<bundles_post_ra>
// kernel: rnn_stack_forward.1
= control target key start
LH: loop header
LB: loop body
LE: loop exit
PB: predicated region body
PF: predicated region fallthrough
CT: control target
= control target key end

     0   :  { %13 = vsyncpa [#allocation3], 0  ;;  %s5130_s0 = inlined_call_operand.vmem [shape: f32[8,8,1], index: 0, kind: input, shape index: {}]   ;;  %s5131_s1 = inlined_call_operand.hbm [shape: f32[3,1,32], index: 1, kind: input, shape index: {}]   ;;  %s5132_s2 = inlined_call_operand.hbm [shape: f32[3,1,32], index: 2, kind: input, shape index: {}]   ;;  %s5133_s3 = inlined_call_operand.hbm [shape: f32[3,1,32], index: 3, kind: input, shape index: {}]   ;;  %s5134_s4 = inlined_call_operand.hbm [shape: f32[3,32,32], index: 4, kind: input, shape index: {}]   ;;  %s5135_s5 = inlined_call_operand.vmem [shape: f32[2,32,32], index: 5, kind: input, shape index: {}]   ;;  %s5136_s6 = inlined_call_operand.vmem [shape: f32[32,32], index: 6, kind: input, shape index: {}]   ;;  %s5137_s7 = inlined_call_operand.vmem [shape: f32[1,32], index: 7, kind: input, shape index: {}]   ;;  %s5138_s8 = inlined_call_operand.vmem [shape: f32[8,128], index: 8, kind: output, shape index: {}]  }
   0x1   :  { %14 = vsyncpa [#allocation5], 0 }
   0x2   :  { %15 = vsyncpa [#allocation8], 0  ;;  %s4517_s27 = smov [#allocation4]   ;;  %s4518_s29 = smov [#allocation2]  }
   0x3   :  { %s35_s28 = sshll.u32 %s4517_s27, 4  ;;  %s23_s30 = sshll.u32 %s4518_s29, 4  ;;  %s36_s28 = int_to_ptr.vmem [resolvable:$true] %s35_s28  ;;  %s4577_s30 = int_to_ptr.vmem [resolvable:$true] %s23_s30 }
   0x4   :  { %s4423_s11 = scalar_lea.hbm %s5132_s2, 48 }
   0x5   :  { %p4424_p0 = scmp.ne.s32.totalorder %s5132_s2, %s4423_s11  ;;  %p4427_p1 = scmp.lt.u32.totalorder %s4423_s11, %s5132_s2 }
   0x7   :  { %p4429_p2 = pnand %p4427_p1, %p4424_p0 }
   0x9   :  { %4432 = shalt.err (!%p4429_p2)
}
   0xa   :  { %s4433_s16 = scalar_lea.vmem %s36_s28, 48  ;;  %s4437_s17 = scalar_lea.vmem %s36_s28, 64 }
   0xb   :  { %p4434_p3 = scmp.ne.s32.totalorder %s36_s28, %s4433_s16  ;;  %p4438_p4 = scmp.lt.s32.totalorder %s36_s28, %s36_s28 }
   0xc   :  { %p4439_p5 = scmp.lt.s32.totalorder %s4437_s17, %s4433_s16 }
   0xe   :  { %p4440_p6 = por %p4439_p5, %p4438_p4 }
  0x10   :  { %p4441_p7 = pnand %p4440_p6, %p4434_p3 }
  0x12   :  { %4444 = shalt.err (!%p4441_p7)
}
  0x13   :  { %s4519_s18 = smov 16   ;;  %s4520_s19 = smov 1  }
  0x14   :  { %41 = dma.hbm_to_vmem [thread:$0]  %s5132_s2, 48, %s36_s28, [#allocation5], %s4519_s18, %s4519_s18, %s4520_s19  }
  0x15   :  { %s4445_s24 = scalar_lea.hbm %s5131_s1, 48 }
  0x16   :  { %p4446_p8 = scmp.ne.s32.totalorder %s5131_s1, %s4445_s24  ;;  %p4449_p9 = scmp.lt.u32.totalorder %s4445_s24, %s5131_s1 }
  0x18   :  { %p4451_p10 = pnand %p4449_p9, %p4446_p8 }
  0x1a   :  { %4454 = shalt.err (!%p4451_p10)
}
  0x1b   :  { %s4455_s9 = scalar_lea.vmem %s4577_s30, 48  ;;  %s4459_s2 = scalar_lea.vmem %s4577_s30, 64 }
  0x1c   :  { %p4456_p11 = scmp.ne.s32.totalorder %s4577_s30, %s4455_s9  ;;  %p4460_p12 = scmp.lt.s32.totalorder %s4577_s30, %s4577_s30 }
  0x1d   :  { %p4461_p13 = scmp.lt.s32.totalorder %s4459_s2, %s4455_s9 }
  0x1f   :  { %p4462_p0 = por %p4461_p13, %p4460_p12 }
  0x21   :  { %p4463_p1 = pnand %p4462_p0, %p4456_p11 }
  0x23   :  { %4466 = shalt.err (!%p4463_p1)
}
  0x24   :  { %29 = dma.hbm_to_vmem [thread:$0]  %s5131_s1, 48, %s4577_s30, [#allocation3], %s4519_s18, %s4519_s18, %s4520_s19  }
  0x25   :  { %s4521_s11 = smov [#allocation6]   ;;  %s4522_s13 = smov [#allocation7]  }
  0x26   :  { %s47_s12 = sshll.u32 %s4521_s11, 4  ;;  %s59_s14 = sshll.u32 %s4522_s13, 4  ;;  %s48_s12 = int_to_ptr.vmem [resolvable:$true] %s47_s12  ;;  %s4615_s14 = int_to_ptr.vmem [resolvable:$true] %s59_s14 }
  0x27   :  { %s4467_s17 = scalar_lea.hbm %s5133_s3, 48 }
  0x28   :  { %p4468_p2 = scmp.ne.s32.totalorder %s5133_s3, %s4467_s17  ;;  %p4471_p3 = scmp.lt.u32.totalorder %s4467_s17, %s5133_s3 }
  0x2a   :  { %p4473_p4 = pnand %p4471_p3, %p4468_p2 }
  0x2c   :  { %4476 = shalt.err (!%p4473_p4)
}
  0x2d   :  { %s4477_s1 = scalar_lea.vmem %s48_s12, 48  ;;  %s4481_s30 = scalar_lea.vmem %s48_s12, 64 }
  0x2e   :  { %p4478_p5 = scmp.ne.s32.totalorder %s48_s12, %s4477_s1  ;;  %p4482_p6 = scmp.lt.s32.totalorder %s48_s12, %s48_s12 }
  0x2f   :  { %p4483_p7 = scmp.lt.s32.totalorder %s4481_s30, %s4477_s1 }
  0x31   :  { %p4484_p8 = por %p4483_p7, %p4482_p6 }
  0x33   :  { %p4485_p9 = pnand %p4484_p8, %p4478_p5 }
  0x35   :  { %4488 = shalt.err (!%p4485_p9)
}
  0x36   :  { %53 = dma.hbm_to_vmem [thread:$0]  %s5133_s3, 48, %s48_s12, [#allocation5], %s4519_s18, %s4519_s18, %s4520_s19  }
  0x37   :  { %s4489_s29 = scalar_lea.hbm %s5134_s4, 1536 }
  0x38   :  { %p4490_p10 = scmp.ne.s32.totalorder %s5134_s4, %s4489_s29  ;;  %p4493_p11 = scmp.lt.u32.totalorder %s4489_s29, %s5134_s4 }
  0x3a   :  { %p4495_p12 = pnand %p4493_p11, %p4490_p10 }
  0x3c   :  { %4498 = shalt.err (!%p4495_p12)
}
  0x3d   :  { %s4499_s11 = scalar_lea.vmem %s4615_s14, 1536  ;;  %p4504_p0 = scmp.lt.s32.totalorder %s4615_s14, %s4615_s14 }
  0x3e   :  { %p4500_p13 = scmp.ne.s32.totalorder %s4615_s14, %s4499_s11  ;;  %p4505_p1 = scmp.lt.s32.totalorder %s4499_s11, %s4499_s11 }
  0x40   :  { %p4506_p2 = por %p4505_p1, %p4504_p0 }
  0x42   :  { %p4507_p3 = pnand %p4506_p2, %p4500_p13 }
  0x44   :  { %4510 = shalt.err (!%p4507_p3)
}
  0x45   :  { %s4523_s3 = smov 128   ;;  %s4524_s18 = smov 8  }
  0x46   :  { %65 = dma.hbm_to_vmem [thread:$0]  %s5134_s4, 1536, %s4615_s14, [#allocation8], %s4523_s3, %s4523_s3, %s4524_s18  }
  0x47   :  { %4511 = dma.done.wait [#allocation3], 48  }
  0x48   :  { %4512 = vsyncadd [#allocation3], 4294967248 }
  0x49   :  { %4513 = dma.done.wait [#allocation5], 96  }
  0x4a   :  { %4514 = vsyncadd [#allocation5], 4294967200 }
  0x4b   :  { %4515 = dma.done.wait [#allocation8], 1536  }
  0x4c   :  { %4516 = vsyncadd [#allocation8], 4294965760  ;;  %v4525_v0 = vmov 0.0|0.0   ;;  %vm4526_vm0 = vmmov 0   ;;  %v4527_v1 = vmov 0.0   ;;  %v4528_v2 = vmov 0  }
  0x4d   :  { %4096 = vmatprep.subr.bf16.mxu0 %v4525_v0  ;;  %3653 = vmatprep.mubr.msk.f32.mxu0 %vm4526_vm0, %v4527_v1  ;;  %v84_v3 = vld [vmem:[#allocation7] sm:$0xff]  ;;  %v85_v4 = vld [vmem:[#allocation7 + $0x8] sm:$0xff]  ;;  %v86_v5 = vld [vmem:[#allocation7 + $0x10] sm:$0xff]  ;;  %vm254_vm2 = vcmask 261120   ;;  %s4529_s22 = smov 32   ;;  %s4530_s25 = smov 64  }
  0x4e   :  { %4421 = vset.pattern.permute.xlu0 %v4528_v2  ;;  %4102 = vmatprep.subr.bf16.mxu1 %v4525_v0  ;;  %v4655_v6 = vpack.c.bf16 %v85_v4, %v84_v3  ;;  %v87_v7 = vld [vmem:[#allocation7 + $0x18] sm:$0xff]  ;;  %v89_v12 = vld [vmem:[#allocation7 + $0x20] sm:$0xff]  ;;  %v90_v13 = vld [vmem:[#allocation7 + $0x28] sm:$0xff]  ;;  %s4531_s27 = smov 96  }
  0x4f   :  { %3664 = vmatprep.mubr.msk.f32.mxu1 %vm4526_vm0, %v4527_v1  ;;  %4422 = vset.pattern.permute.xlu1 %v4528_v2  ;;  %v112_v8 = vld [vmem:[%s5130_s0] sm:$0xff]  ;;  %v4661_v9 = vpack.c.bf16 %v87_v7, %v86_v5  ;;  %v113_v10 = vld [vmem:[%s5130_s0 + $0x8] sm:$0xff]  ;;  %v118_v14 = vld [vmem:[%s5130_s0 + $0x30] sm:$0xff]  ;;  %v4676_v15 = vpack.c.bf16 %v90_v13, %v89_v12 }
  0x50   :  { %123 = vperm.xlu0 %4421, %v112_v8   ;;  %4098 = vmatpush3.bf16.msra.mxu0 %v4655_v6  ;;  %v116_v11 = vld [vmem:[%s5130_s0 + $0x20] sm:$0xff]  ;;  %v99_v20 = vld [vmem:[%s5135_s5 + $0x8] sm:$0xff]  ;;  %v100_v22 = vld [vmem:[%s5135_s5 + $0x10] sm:$0xff] }
  0x51   :  { %4099 = vmatprep.subr.bf16.mxu0 %v4525_v0  ;;  %4104 = vmatpush3.bf16.msra.mxu1 %v4676_v15  ;;  %v91_v16 = vld [vmem:[#allocation7 + $0x30] sm:$0xff]  ;;  %v92_v17 = vld [vmem:[#allocation7 + $0x38] sm:$0xff]  ;;  %v94_v25 = vld [vmem:[#allocation7 + $0x40] sm:$0xff] }
  0x52   :  { %4105 = vmatprep.subr.bf16.mxu1 %v4525_v0  ;;  %v4682_v18 = vpack.c.bf16 %v92_v17, %v91_v16  ;;  %v98_v19 = vld [vmem:[%s5135_s5] sm:$0xff]  ;;  %v101_v23 = vld [vmem:[%s5135_s5 + $0x18] sm:$0xff]  ;;  %v3389_v32 = vld [vmem:[%s5135_s5 + $0x28] sm:$0xff] }
  0x53   :  { %v4695_v21 = vpack.c.bf16 %v99_v20, %v98_v19  ;;  %v4705_v24 = vpack.c.bf16 %v101_v23, %v100_v22  ;;  %v95_v26 = vld [vmem:[#allocation7 + $0x48] sm:$0xff]  ;;  %v96_v27 = vld [vmem:[#allocation7 + $0x50] sm:$0xff]  ;;  %v97_v29 = vld [vmem:[#allocation7 + $0x58] sm:$0xff] }
  0x54   :  { %128 = vperm.xlu0 %4421, %v113_v10   ;;  %4101 = vmatpush3.bf16.msra.mxu0 %v4661_v9  ;;  %v4709_v28 = vpack.c.bf16 %v95_v26, %v94_v25  ;;  %v4712_v30 = vpack.c.bf16 %v97_v29, %v96_v27  ;;  %v3388_v31 = vld [vmem:[%s5135_s5 + $0x20] sm:$0xff]  ;;  %v4738_v38 = vld [vmem:[#allocation6] ss:$0 sm:$0xff]  ;;  %v3390_v47 = vld [vmem:[%s5135_s5 + $0x30] sm:$0xff] }
  0x55   :  { %4114 = vmatprep.subr.bf16.mxu0 %v4525_v0  ;;  %4107 = vmatpush3.bf16.msra.mxu1 %v4682_v18  ;;  %v4722_v33 = vpack.c.bf16 %v3389_v32, %v3388_v31  ;;  %v4730_v34 = vld [vmem:[#allocation2] ss:$0 sm:$0xff]  ;;  %v4736_v37 = vld [vmem:[#allocation4] ss:$0 sm:$0xff]  ;;  %v334_v40 = vmul.f32 0.0, %v4738_v38  ;;  %v3391_v48 = vld [vmem:[%s5135_s5 + $0x38] sm:$0xff] }
  0x56   :  { %4108 = vmatprep.subr.bf16.mxu1 %v4525_v0  ;;  %v4762_v49 = vpack.c.bf16 %v3391_v48, %v3390_v47  ;;  %v114_v50 = vld [vmem:[%s5130_s0 + $0x10] sm:$0xff]  ;;  %v115_v51 = vld [vmem:[%s5130_s0 + $0x18] sm:$0xff]  ;;  %v117_v52 = vld [vmem:[%s5130_s0 + $0x28] sm:$0xff] }
  0x57   :  { %3654 = vmatmul.mubr.f32.vlgmr.msra.gmra.mrb[0].mxu0 %v4527_v1  ;;  %133 = vperm.xlu1 %4422, %v114_v50   ;;  %v119_v53 = vld [vmem:[%s5130_s0 + $0x38] sm:$0xff]  ;;  %v4778_v54 = vld [vmem:[#allocation2 + $0x1] ss:$0 sm:$0xff]  ;;  %v4782_v56 = vld [vmem:[#allocation6 + $0x1] ss:$0 sm:$0xff] }
  0x58   :  { %143 = vperm.xlu0 %4421, %v116_v11   ;;  %3686 = vmatprep.mubr.msk.f32.mxu0 %vm4526_vm0, %v4527_v1  ;;  %v4784_v57 = vld [vmem:[#allocation4 + $0x1] ss:$0 sm:$0xff]  ;;  %v415_v59 = vmul.f32 0.0, %v4782_v56  ;;  %v4822_v23 = vld [vmem:[#allocation2 + $0x2] ss:$0 sm:$0xff] }
  0x59   :  { %3665 = vmatmul.mubr.f32.vlgmr.msra.gmra.mrb[0].mxu1 %v4527_v1  ;;  %4116 = vmatpush3.bf16.msra.mxu0 %v4709_v28  ;;  %v4826_v26 = vld [vmem:[#allocation6 + $0x2] ss:$0 sm:$0xff]  ;;  %v4828_v27 = vld [vmem:[#allocation4 + $0x2] ss:$0 sm:$0xff] }
  0x5a   :  { %3675 = vmatprep.mubr.msk.f32.mxu1 %vm4526_vm0, %v4527_v1  ;;  %4110 = vmatpush3.bf16.msra.mxu1 %v4695_v21  ;;  %v570_v31 = vmul.f32 0.0, %v4826_v26 }
  0x5b   :  { %4111 = vmatprep.subr.bf16.mxu1 %v4525_v0  ;;  %4117 = vmatprep.subr.bf16.mxu0 %v4525_v0 }
  0x5c   :  { %153 = vperm.xlu0 %4421, %v118_v14   ;;  %138 = vperm.xlu1 %4422, %v115_v51  }
  0x5d   :  { %4119 = vmatpush3.bf16.msra.mxu0 %v4712_v30 }
  0x5e   :  { %4113 = vmatpush3.bf16.msra.mxu1 %v4705_v24  ;;  %4120 = vmatprep.subr.bf16.mxu0 %v4525_v0 }
  0x5f   :  { %4126 = vmatprep.subr.bf16.mxu1 %v4525_v0 }
  0x60   :  { %3687 = vmatmul.mubr.f32.vlgmr.msra.gmra.mrb[2].mxu0 %v4527_v1  ;;  %148 = vperm.xlu1 %4422, %v117_v52  }
  0x61   :  { %4122 = vmatpush3.bf16.msra.mxu0 %v4722_v33  ;;  %3697 = vmatprep.mubr.msk.f32.mxu0 %vm4526_vm0, %v4527_v1 }
  0x62   :  { %4123 = vmatprep.subr.bf16.mxu0 %v4525_v0 }
  0x64   :  { %158 = vperm.xlu1 %4422, %v119_v53  }
  0x65   :  { %4125 = vmatpush3.bf16.msra.mxu0 %v4762_v49 }
  0x66   :  { %4132 = vmatprep.subr.bf16.mxu0 %v4525_v0 }
  0xcf   :  { %v4732_v35 = vpop.permute.xlu0 %123 }
  0xd0   :  { %v167_v36 = vmul.f32 %v4730_v34, %v4732_v35  ;;  %v198_v55 = vmul.f32 %v4778_v54, %v4732_v35  ;;  %v230_v25 = vmul.f32 %v4822_v23, %v4732_v35 }
  0xd2   :  { %v182_v39 = vadd.f32 %v4736_v37, %v167_v36  ;;  %v214_v58 = vadd.f32 %v4784_v57, %v198_v55  ;;  %v246_v29 = vadd.f32 %v4828_v27, %v230_v25 }
  0xd3   :  { %v129_v62 = vpop.permute.xlu0 %128 }
  0xd4   :  { %v4342_v60 = vadd.f32 %v415_v59, %v214_v58  ;;  %v199_v3 = vmul.f32 %v4778_v54, %v129_v62  ;;  %v168_v4 = vmul.f32 %v4730_v34, %v129_v62  ;;  %v4344_v32 = vadd.f32 %v570_v31, %v246_v29 }
  0xd6   :  { %v215_v8 = vadd.f32 %v4784_v57, %v199_v3  ;;  %v183_v11 = vadd.f32 %v4736_v37, %v168_v4 }
 0x12a   :  { %v324_v41 = vpop.f32.mrb[0].mxu0 }
 0x12b   :  { %v325_v42 = vadd.f32 %v324_v41, %v182_v39  ;;  %v3655_v43 = vpop.f32.mrb[1].mxu0  ;;  %v231_v41 = vmul.f32 %v4822_v23, %v129_v62 }
 0x12d   :  { %v335_v44 = vadd.f32 %v334_v40, %v325_v42  ;;  %v247_v35 = vadd.f32 %v4828_v27, %v231_v41 }
 0x12f   :  { %vm336_vm1 = vcmp.ge.f32.partialorder %v335_v44, 0.0  ;;  %v337_v45 = vmul.f32 0.01, %v335_v44 }
 0x131   :  { %v338_v46 = vsel %vm336_vm1, %v335_v44, %v337_v45 }
 0x132   :  { %3676 = vmatmul.mubr.msk.f32.vlgmr.msra.gmra.mrb[0].mxu1 %vm254_vm2, %v338_v46  ;;  %v719_v16 = vmul.f32 %v4738_v38, %v338_v46 }
 0x133   :  { %4128 = vmatpush3.bf16.msra.mxu1 %v4655_v6  ;;  %3708 = vmatprep.mubr.msk.f32.mxu1 %vm4526_vm0, %v4527_v1 }
 0x134   :  { %4129 = vmatprep.subr.bf16.mxu1 %v4525_v0 }
 0x137   :  { %4131 = vmatpush3.bf16.msra.mxu1 %v4661_v9 }
 0x138   :  { %4144 = vmatprep.subr.bf16.mxu1 %v4525_v0 }
 0x13a   :  { %3709 = vmatmul.mubr.msk.f32.vlgmr.msra.gmra.mrb[2].mxu1 %vm254_vm2, %v338_v46  ;;  %v134_v46 = vpop.permute.xlu1 %133 }
 0x13b   :  { %4146 = vmatpush3.bf16.msra.mxu1 %v4709_v28  ;;  %3741 = vmatprep.mubr.msk.f32.mxu1 %vm4526_vm0, %v4527_v1  ;;  %v200_v47 = vmul.f32 %v4778_v54, %v134_v46  ;;  %v169_v50 = vmul.f32 %v4730_v34, %v134_v46 }
 0x13c   :  { %4147 = vmatprep.subr.bf16.mxu1 %v4525_v0 }
 0x13d   :  { %v216_v55 = vadd.f32 %v4784_v57, %v200_v47  ;;  %v184_v59 = vadd.f32 %v4736_v37, %v169_v50 }
 0x13f   :  { %4149 = vmatpush3.bf16.msra.mxu1 %v4712_v30 }
 0x140   :  { %4150 = vmatprep.subr.bf16.mxu1 %v4525_v0 }
 0x205   :  { %v486_v61 = vpop.f32.mrb[0].mxu1 }
 0x206   :  { %v4343_v63 = vadd.f32 %v4342_v60, %v486_v61  ;;  %v3677_v2 = vpop.f32.mrb[1].mxu1 }
 0x208   :  { %vm491_vm3 = vcmp.ge.f32.partialorder %v4343_v63, 0.0  ;;  %v492_v5 = vmul.f32 0.01, %v4343_v63 }
 0x20a   :  { %v493_v7 = vsel %vm491_vm3, %v4343_v63, %v492_v5 }
 0x20b   :  { %3698 = vmatmul.mubr.msk.f32.vlgmr.msra.gmra.mrb[2].mxu0 %vm254_vm2, %v493_v7  ;;  %v794_v10 = vmul.f32 %v4782_v56, %v493_v7 }
 0x20c   :  { %4134 = vmatpush3.bf16.msra.mxu0 %v4676_v15  ;;  %3719 = vmatprep.mubr.msk.f32.mxu0 %vm4526_vm0, %v4527_v1 }
 0x20d   :  { %v715_v12 = vpop.f32.mrb[2].mxu1  ;;  %4135 = vmatprep.subr.bf16.mxu0 %v4525_v0  ;;  %v4346_v13 = vadd.f32 %v794_v10, %v215_v8 }
 0x20e   :  { %v716_v14 = vadd.f32 %v715_v12, %v183_v11  ;;  %v3710_v17 = vpop.f32.mrb[3].mxu1  ;;  %v232_v12 = vmul.f32 %v4822_v23, %v134_v46 }
 0x210   :  { %v720_v19 = vadd.f32 %v719_v16, %v716_v14  ;;  %4137 = vmatpush3.bf16.msra.mxu0 %v4682_v18  ;;  %v248_v16 = vadd.f32 %v4828_v27, %v232_v12 }
 0x211   :  { %4138 = vmatprep.subr.bf16.mxu0 %v4525_v0 }
 0x212   :  { %v722_v20 = vmul.f32 0.01, %v720_v19  ;;  %vm721_vm4 = vcmp.ge.f32.partialorder %v720_v19, 0.0 }
 0x213   :  { %3720 = vmatmul.mubr.msk.f32.vlgmr.msra.gmra.mrb[4].mxu0 %vm254_vm2, %v493_v7 }
 0x214   :  { %4140 = vmatpush3.bf16.msra.mxu0 %v4695_v21  ;;  %3730 = vmatprep.mubr.msk.f32.mxu0 %vm4526_vm0, %v4527_v1  ;;  %v723_v22 = vsel %vm721_vm4, %v720_v19, %v722_v20 }
 0x215   :  { %4141 = vmatprep.subr.bf16.mxu0 %v4525_v0  ;;  %v1095_v2 = vmul.f32 %v4738_v38, %v723_v22 }
 0x218   :  { %4143 = vmatpush3.bf16.msra.mxu0 %v4705_v24 }
 0x219   :  { %4156 = vmatprep.subr.bf16.mxu0 %v4525_v0 }
 0x21b   :  { %3731 = vmatmul.mubr.msk.f32.vlgmr.msra.gmra.mrb[4].mxu0 %vm254_vm2, %v723_v22 }
 0x21c   :  { %4158 = vmatpush3.bf16.msra.mxu0 %v4655_v6  ;;  %3763 = vmatprep.mubr.msk.f32.mxu0 %vm4526_vm0, %v4527_v1 }
 0x21d   :  { %4159 = vmatprep.subr.bf16.mxu0 %v4525_v0 }
 0x220   :  { %4161 = vmatpush3.bf16.msra.mxu0 %v4661_v9 }
 0x221   :  { %4174 = vmatprep.subr.bf16.mxu0 %v4525_v0 }
 0x223   :  { %3764 = vmatmul.mubr.msk.f32.vlgmr.msra.gmra.mrb[6].mxu0 %vm254_vm2, %v723_v22  ;;  %v139_v22 = vpop.permute.xlu1 %138 }
 0x224   :  { %4176 = vmatpush3.bf16.msra.mxu0 %v4709_v28  ;;  %3796 = vmatprep.mubr.msk.f32.mxu0 %vm4526_vm0, %v4527_v1  ;;  %v201_v31 = vmul.f32 %v4778_v54, %v139_v22 }
 0x225   :  { %4177 = vmatprep.subr.bf16.mxu0 %v4525_v0 }
 0x228   :  { %4179 = vmatpush3.bf16.msra.mxu0 %v4712_v30 }
 0x229   :  { %4180 = vmatprep.subr.bf16.mxu0 %v4525_v0 }
 0x2de   :  { %v641_v36 = vpop.f32.mrb[2].mxu0 }
 0x2df   :  { %v4345_v39 = vadd.f32 %v4344_v32, %v641_v36  ;;  %v3699_v40 = vpop.f32.mrb[3].mxu0  ;;  %v170_v32 = vmul.f32 %v4730_v34, %v139_v22 }
 0x2e0   :  { %v217_v40 = vadd.f32 %v4784_v57, %v201_v31 }
 0x2e1   :  { %vm646_vm5 = vcmp.ge.f32.partialorder %v4345_v39, 0.0  ;;  %v647_v42 = vmul.f32 0.01, %v4345_v39 }
 0x2e3   :  { %v648_v43 = vsel %vm646_vm5, %v4345_v39, %v647_v42  ;;  %v185_v42 = vadd.f32 %v4736_v37, %v170_v32 }
 0x2e4   :  { %3742 = vmatmul.mubr.msk.f32.vlgmr.msra.gmra.mrb[4].mxu1 %vm254_vm2, %v648_v43  ;;  %v946_v44 = vmul.f32 %v4826_v26, %v648_v43 }
 0x2e5   :  { %4152 = vmatpush3.bf16.msra.mxu1 %v4722_v33  ;;  %3752 = vmatprep.mubr.msk.f32.mxu1 %vm4526_vm0, %v4527_v1 }
 0x2e6   :  { %4153 = vmatprep.subr.bf16.mxu1 %v4525_v0  ;;  %v4348_v45 = vadd.f32 %v946_v44, %v247_v35 }
 0x2e9   :  { %4155 = vmatpush3.bf16.msra.mxu1 %v4762_v49 }
 0x2ea   :  { %4162 = vmatprep.subr.bf16.mxu1 %v4525_v0 }
 0x2ee   :  { %v865_v48 = vpop.f32.mrb[4].mxu0 }
 0x2ef   :  { %v4347_v51 = vadd.f32 %v4346_v13, %v865_v48  ;;  %v3732_v52 = vpop.f32.mrb[5].mxu0 }
 0x2f1   :  { %vm870_vm6 = vcmp.ge.f32.partialorder %v4347_v51, 0.0  ;;  %v871_v53 = vmul.f32 0.01, %v4347_v51 }
 0x2f3   :  { %v872_v58 = vsel %vm870_vm6, %v4347_v51, %v871_v53 }
 0x2f4   :  { %3753 = vmatmul.mubr.msk.f32.vlgmr.msra.gmra.mrb[4].mxu1 %vm254_vm2, %v872_v58  ;;  %v1170_v60 = vmul.f32 %v4782_v56, %v872_v58 }
 0x2f5   :  { %4164 = vmatpush3.bf16.msra.mxu1 %v4676_v15  ;;  %3774 = vmatprep.mubr.msk.f32.mxu1 %vm4526_vm0, %v4527_v1 }
 0x2f6   :  { %v1091_v61 = vpop.f32.mrb[6].mxu0  ;;  %4165 = vmatprep.subr.bf16.mxu1 %v4525_v0  ;;  %v4350_v62 = vadd.f32 %v1170_v60, %v216_v55  ;;  %v233_v55 = vmul.f32 %v4822_v23, %v139_v22 }
 0x2f7   :  { %v1092_v63 = vadd.f32 %v1091_v61, %v184_v59  ;;  %v3765_v3 = vpop.f32.mrb[7].mxu0 }
 0x2f8   :  { %v249_v60 = vadd.f32 %v4828_v27, %v233_v55 }
 0x2f9   :  { %v1096_v4 = vadd.f32 %v1095_v2, %v1092_v63  ;;  %4167 = vmatpush3.bf16.msra.mxu1 %v4682_v18  ;;  %v144_v2 = vpop.permute.xlu0 %143 }
 0x2fa   :  { %4168 = vmatprep.subr.bf16.mxu1 %v4525_v0 }
 0x2fb   :  { %v1098_v5 = vmul.f32 0.01, %v1096_v4  ;;  %vm1097_vm7 = vcmp.ge.f32.partialorder %v1096_v4, 0.0 }
 0x2fc   :  { %3775 = vmatmul.mubr.msk.f32.vlgmr.msra.gmra.mrb[6].mxu1 %vm254_vm2, %v872_v58 }
 0x2fd   :  { %4170 = vmatpush3.bf16.msra.mxu1 %v4695_v21  ;;  %3785 = vmatprep.mubr.msk.f32.mxu1 %vm4526_vm0, %v4527_v1  ;;  %v1099_v7 = vsel %vm1097_vm7, %v1096_v4, %v1098_v5  ;;  %v202_v5 = vmul.f32 %v4778_v54, %v144_v2 }
 0x2fe   :  { %4171 = vmatprep.subr.bf16.mxu1 %v4525_v0 }
 0x301   :  { %4173 = vmatpush3.bf16.msra.mxu1 %v4705_v24 }
 0x302   :  { %4186 = vmatprep.subr.bf16.mxu1 %v4525_v0 }
 0x304   :  { %3786 = vmatmul.mubr.msk.f32.vlgmr.msra.gmra.mrb[6].mxu1 %vm254_vm2, %v1099_v7 }
 0x305   :  { %4188 = vmatpush3.bf16.msra.mxu1 %v4655_v6  ;;  %3818 = vmatprep.mubr.msk.f32.mxu1 %vm4526_vm0, %v4527_v1 }
 0x306   :  { %4189 = vmatprep.subr.bf16.mxu1 %v4525_v0 }
 0x309   :  { %4191 = vmatpush3.bf16.msra.mxu1 %v4661_v9 }
 0x30a   :  { %4204 = vmatprep.subr.bf16.mxu1 %v4525_v0 }
 0x30c   :  { %3819 = vmatmul.mubr.msk.f32.vlgmr.msra.gmra.mrb[8].mxu1 %vm254_vm2, %v1099_v7 }
 0x30d   :  { %4206 = vmatpush3.bf16.msra.mxu1 %v4709_v28  ;;  %3851 = vmatprep.mubr.msk.f32.mxu1 %vm4526_vm0, %v4527_v1 }
 0x30e   :  { %4207 = vmatprep.subr.bf16.mxu1 %v4525_v0 }
 0x311   :  { %4209 = vmatpush3.bf16.msra.mxu1 %v4712_v30 }
 0x312   :  { %4210 = vmatprep.subr.bf16.mxu1 %v4525_v0 }
 0x3c7   :  { %v1017_v8 = vpop.f32.mrb[4].mxu1 }
 0x3c8   :  { %v4349_v10 = vadd.f32 %v4348_v45, %v1017_v8  ;;  %v3754_v11 = vpop.f32.mrb[5].mxu1  ;;  %v1471_v45 = vmul.f32 %v4738_v38, %v1099_v7  ;;  %v171_v7 = vmul.f32 %v4730_v34, %v144_v2 }
 0x3c9   :  { %v218_v11 = vadd.f32 %v4784_v57, %v202_v5 }
 0x3ca   :  { %vm1022_vm8 = vcmp.ge.f32.partialorder %v4349_v10, 0.0  ;;  %v1023_v13 = vmul.f32 0.01, %v4349_v10 }
 0x3cc   :  { %v1024_v14 = vsel %vm1022_vm8, %v4349_v10, %v1023_v13  ;;  %v186_v13 = vadd.f32 %v4736_v37, %v171_v7 }
 0x3cd   :  { %3797 = vmatmul.mubr.msk.f32.vlgmr.msra.gmra.mrb[8].mxu0 %vm254_vm2, %v1024_v14  ;;  %v1322_v17 = vmul.f32 %v4826_v26, %v1024_v14 }
 0x3ce   :  { %4182 = vmatpush3.bf16.msra.mxu0 %v4722_v33  ;;  %3807 = vmatprep.mubr.msk.f32.mxu0 %vm4526_vm0, %v4527_v1 }
 0x3cf   :  { %4183 = vmatprep.subr.bf16.mxu0 %v4525_v0  ;;  %v4352_v19 = vadd.f32 %v1322_v17, %v248_v16 }
 0x3d2   :  { %4185 = vmatpush3.bf16.msra.mxu0 %v4762_v49 }
 0x3d3   :  { %4192 = vmatprep.subr.bf16.mxu0 %v4525_v0 }
 0x3d7   :  { %v1241_v20 = vpop.f32.mrb[6].mxu1 }
 0x3d8   :  { %v4351_v25 = vadd.f32 %v4350_v62, %v1241_v20  ;;  %v3787_v29 = vpop.f32.mrb[7].mxu1 }
 0x3da   :  { %vm1246_vm9 = vcmp.ge.f32.partialorder %v4351_v25, 0.0  ;;  %v1247_v36 = vmul.f32 0.01, %v4351_v25 }
 0x3dc   :  { %v1248_v39 = vsel %vm1246_vm9, %v4351_v25, %v1247_v36 }
 0x3dd   :  { %3808 = vmatmul.mubr.msk.f32.vlgmr.msra.gmra.mrb[8].mxu0 %vm254_vm2, %v1248_v39  ;;  %v1546_v41 = vmul.f32 %v4782_v56, %v1248_v39 }
 0x3de   :  { %4194 = vmatpush3.bf16.msra.mxu0 %v4676_v15  ;;  %3829 = vmatprep.mubr.msk.f32.mxu0 %vm4526_vm0, %v4527_v1 }
 0x3df   :  { %v1467_v43 = vpop.f32.mrb[8].mxu1  ;;  %4195 = vmatprep.subr.bf16.mxu0 %v4525_v0  ;;  %v4354_v35 = vadd.f32 %v1546_v41, %v217_v40 }
 0x3e0   :  { %v1468_v44 = vadd.f32 %v1467_v43, %v185_v42  ;;  %v3820_v46 = vpop.f32.mrb[9].mxu1 }
 0x3e2   :  { %v1472_v47 = vadd.f32 %v1471_v45, %v1468_v44  ;;  %4197 = vmatpush3.bf16.msra.mxu0 %v4682_v18  ;;  %v149_v45 = vpop.permute.xlu1 %148 }
 0x3e3   :  { %4198 = vmatprep.subr.bf16.mxu0 %v4525_v0 }
 0x3e4   :  { %v1474_v48 = vmul.f32 0.01, %v1472_v47  ;;  %vm1473_vm10 = vcmp.ge.f32.partialorder %v1472_v47, 0.0 }
 0x3e5   :  { %3830 = vmatmul.mubr.msk.f32.vlgmr.msra.gmra.mrb[10].mxu0 %vm254_vm2, %v1248_v39  ;;  %v234_v39 = vmul.f32 %v4822_v23, %v144_v2 }
 0x3e6   :  { %4200 = vmatpush3.bf16.msra.mxu0 %v4695_v21  ;;  %3840 = vmatprep.mubr.msk.f32.mxu0 %vm4526_vm0, %v4527_v1  ;;  %v1475_v50 = vsel %vm1473_vm10, %v1472_v47, %v1474_v48  ;;  %v203_v48 = vmul.f32 %v4778_v54, %v149_v45 }
 0x3e7   :  { %4201 = vmatprep.subr.bf16.mxu0 %v4525_v0  ;;  %v250_v42 = vadd.f32 %v4828_v27, %v234_v39 }
 0x3ea   :  { %4203 = vmatpush3.bf16.msra.mxu0 %v4705_v24 }
 0x3eb   :  { %4216 = vmatprep.subr.bf16.mxu0 %v4525_v0 }
 0x3ed   :  { %3841 = vmatmul.mubr.msk.f32.vlgmr.msra.gmra.mrb[10].mxu0 %vm254_vm2, %v1475_v50 }
 0x3ee   :  { %4218 = vmatpush3.bf16.msra.mxu0 %v4655_v6  ;;  %3873 = vmatprep.mubr.msk.f32.mxu0 %vm4526_vm0, %v4527_v1 }
 0x3ef   :  { %4219 = vmatprep.subr.bf16.mxu0 %v4525_v0 }
 0x3f2   :  { %4221 = vmatpush3.bf16.msra.mxu0 %v4661_v9 }
 0x3f3   :  { %4234 = vmatprep.subr.bf16.mxu0 %v4525_v0 }
 0x3f5   :  { %3874 = vmatmul.mubr.msk.f32.vlgmr.msra.gmra.mrb[12].mxu0 %vm254_vm2, %v1475_v50 }
 0x3f6   :  { %4236 = vmatpush3.bf16.msra.mxu0 %v4709_v28  ;;  %3906 = vmatprep.mubr.msk.f32.mxu0 %vm4526_vm0, %v4527_v1 }
 0x3f7   :  { %4237 = vmatprep.subr.bf16.mxu0 %v4525_v0 }
 0x3fa   :  { %4239 = vmatpush3.bf16.msra.mxu0 %v4712_v30 }
 0x3fb   :  { %4240 = vmatprep.subr.bf16.mxu0 %v4525_v0 }
 0x4b0   :  { %v1393_v51 = vpop.f32.mrb[8].mxu0 }
 0x4b1   :  { %v4353_v52 = vadd.f32 %v4352_v19, %v1393_v51  ;;  %v3809_v53 = vpop.f32.mrb[9].mxu0  ;;  %v1847_v19 = vmul.f32 %v4738_v38, %v1475_v50  ;;  %v172_v50 = vmul.f32 %v4730_v34, %v149_v45 }
 0x4b2   :  { %v219_v53 = vadd.f32 %v4784_v57, %v203_v48 }
 0x4b3   :  { %vm1398_vm11 = vcmp.ge.f32.partialorder %v4353_v52, 0.0  ;;  %v1399_v58 = vmul.f32 0.01, %v4353_v52 }
 0x4b5   :  { %v1400_v59 = vsel %vm1398_vm11, %v4353_v52, %v1399_v58  ;;  %v187_v58 = vadd.f32 %v4736_v37, %v172_v50  ;;  %v5063_v50 = vpop.permute.xlu1 %158  ;;  %vm3376_vm11 = vcmask 523264  }
 0x4b6   :  { %3852 = vmatmul.mubr.msk.f32.vlgmr.msra.gmra.mrb[10].mxu1 %vm254_vm2, %v1400_v59  ;;  %v1698_v61 = vmul.f32 %v4826_v26, %v1400_v59 }
 0x4b7   :  { %4212 = vmatpush3.bf16.msra.mxu1 %v4722_v33  ;;  %3862 = vmatprep.mubr.msk.f32.mxu1 %vm4526_vm0, %v4527_v1 }
 0x4b8   :  { %4213 = vmatprep.subr.bf16.mxu1 %v4525_v0  ;;  %v4356_v62 = vadd.f32 %v1698_v61, %v249_v60 }
 0x4bb   :  { %4215 = vmatpush3.bf16.msra.mxu1 %v4762_v49 }
 0x4bc   :  { %4222 = vmatprep.subr.bf16.mxu1 %v4525_v0 }
 0x4c0   :  { %v1617_v63 = vpop.f32.mrb[10].mxu0 }
 0x4c1   :  { %v4355_v3 = vadd.f32 %v4354_v35, %v1617_v63  ;;  %v3842_v4 = vpop.f32.mrb[11].mxu0 }
 0x4c3   :  { %vm1622_vm12 = vcmp.ge.f32.partialorder %v4355_v3, 0.0  ;;  %v1623_v8 = vmul.f32 0.01, %v4355_v3 }
 0x4c5   :  { %v1624_v10 = vsel %vm1622_vm12, %v4355_v3, %v1623_v8  ;;  %vm3378_vm12 = vcmask 785408  }
 0x4c6   :  { %3863 = vmatmul.mubr.msk.f32.vlgmr.msra.gmra.mrb[10].mxu1 %vm254_vm2, %v1624_v10  ;;  %v1922_v12 = vmul.f32 %v4782_v56, %v1624_v10 }
 0x4c7   :  { %4224 = vmatpush3.bf16.msra.mxu1 %v4676_v15  ;;  %3884 = vmatprep.mubr.msk.f32.mxu1 %vm4526_vm0, %v4527_v1 }
 0x4c8   :  { %v1843_v14 = vpop.f32.mrb[12].mxu0  ;;  %4225 = vmatprep.subr.bf16.mxu1 %v4525_v0  ;;  %v4358_v16 = vadd.f32 %v1922_v12, %v218_v11 }
 0x4c9   :  { %v1844_v17 = vadd.f32 %v1843_v14, %v186_v13  ;;  %v3875_v20 = vpop.f32.mrb[13].mxu0 }
 0x4cb   :  { %v1848_v22 = vadd.f32 %v1847_v19, %v1844_v17  ;;  %4227 = vmatpush3.bf16.msra.mxu1 %v4682_v18  ;;  %v5018_v17 = vpop.permute.xlu0 %153 }
 0x4cc   :  { %4228 = vmatprep.subr.bf16.mxu1 %v4525_v0 }
 0x4cd   :  { %v1850_v25 = vmul.f32 0.01, %v1848_v22  ;;  %vm1849_vm13 = vcmp.ge.f32.partialorder %v1848_v22, 0.0 }
 0x4ce   :  { %3885 = vmatmul.mubr.msk.f32.vlgmr.msra.gmra.mrb[12].mxu1 %vm254_vm2, %v1624_v10  ;;  %v235_v10 = vmul.f32 %v4822_v23, %v149_v45 }
 0x4cf   :  { %4230 = vmatpush3.bf16.msra.mxu1 %v4695_v21  ;;  %3895 = vmatprep.mubr.msk.f32.mxu1 %vm4526_vm0, %v4527_v1  ;;  %v1851_v29 = vsel %vm1849_vm13, %v1848_v22, %v1850_v25  ;;  %v173_v25 = vmul.f32 %v4730_v34, %v5018_v17 }
 0x4d0   :  { %4231 = vmatprep.subr.bf16.mxu1 %v4525_v0  ;;  %v251_v13 = vadd.f32 %v4828_v27, %v235_v10  ;;  %v205_v10 = vmul.f32 %v4778_v54, %v5063_v50 }
 0x4d3   :  { %4233 = vmatpush3.bf16.msra.mxu1 %v4705_v24 }
 0x4d4   :  { %4246 = vmatprep.subr.bf16.mxu1 %v4525_v0 }
 0x4d6   :  { %3896 = vmatmul.mubr.msk.f32.vlgmr.msra.gmra.mrb[12].mxu1 %vm254_vm2, %v1851_v29 }
 0x4d7   :  { %4248 = vmatpush3.bf16.msra.mxu1 %v4655_v6  ;;  %3928 = vmatprep.mubr.msk.f32.mxu1 %vm4526_vm0, %v4527_v1 }
 0x4d8   :  { %4249 = vmatprep.subr.bf16.mxu1 %v4525_v0 }
 0x4db   :  { %4251 = vmatpush3.bf16.msra.mxu1 %v4661_v9 }
 0x4dc   :  { %4264 = vmatprep.subr.bf16.mxu1 %v4525_v0 }
 0x4de   :  { %3929 = vmatmul.mubr.msk.f32.vlgmr.msra.gmra.mrb[14].mxu1 %vm254_vm2, %v1851_v29 }
 0x4df   :  { %4266 = vmatpush3.bf16.msra.mxu1 %v4709_v28  ;;  %3961 = vmatprep.mubr.msk.f32.mxu1 %vm4526_vm0, %v4527_v1 }
 0x4e0   :  { %4267 = vmatprep.subr.bf16.mxu1 %v4525_v0 }
 0x4e3   :  { %4269 = vmatpush3.bf16.msra.mxu1 %v4712_v30 }
 0x4e4   :  { %4270 = vmatprep.subr.bf16.mxu1 %v4525_v0 }
 0x599   :  { %v1769_v31 = vpop.f32.mrb[10].mxu1 }
 0x59a   :  { %v4357_v32 = vadd.f32 %v4356_v62, %v1769_v31  ;;  %v3864_v36 = vpop.f32.mrb[11].mxu1  ;;  %v2223_v62 = vmul.f32 %v4738_v38, %v1851_v29 }
 0x59c   :  { %vm1774_vm14 = vcmp.ge.f32.partialorder %v4357_v32, 0.0  ;;  %v1775_v40 = vmul.f32 0.01, %v4357_v32 }
 0x59e   :  { %v1776_v41 = vsel %vm1774_vm14, %v4357_v32, %v1775_v40  ;;  %v188_v32 = vadd.f32 %v4736_v37, %v173_v25 }
 0x59f   :  { %3907 = vmatmul.mubr.msk.f32.vlgmr.msra.gmra.mrb[14].mxu0 %vm254_vm2, %v1776_v41  ;;  %v2074_v43 = vmul.f32 %v4826_v26, %v1776_v41 }
 0x5a0   :  { %4242 = vmatpush3.bf16.msra.mxu0 %v4722_v33  ;;  %3917 = vmatprep.mubr.msk.f32.mxu0 %vm4526_vm0, %v4527_v1 }
 0x5a1   :  { %4243 = vmatprep.subr.bf16.mxu0 %v4525_v0  ;;  %v4360_v35 = vadd.f32 %v2074_v43, %v250_v42 }
 0x5a4   :  { %4245 = vmatpush3.bf16.msra.mxu0 %v4762_v49 }
 0x5a5   :  { %4252 = vmatprep.subr.bf16.mxu0 %v4525_v0 }
 0x5a9   :  { %v1993_v44 = vpop.f32.mrb[12].mxu1 }
 0x5aa   :  { %v4359_v46 = vadd.f32 %v4358_v16, %v1993_v44  ;;  %v3897_v47 = vpop.f32.mrb[13].mxu1 }
 0x5ac   :  { %vm1998_vm15 = vcmp.ge.f32.partialorder %v4359_v46, 0.0  ;;  %v1999_v51 = vmul.f32 0.01, %v4359_v46 }
 0x5ae   :  { %v2000_v52 = vsel %vm1998_vm15, %v4359_v46, %v1999_v51 }
 0x5af   :  { %3918 = vmatmul.mubr.msk.f32.vlgmr.msra.gmra.mrb[14].mxu0 %vm254_vm2, %v2000_v52  ;;  %v2298_v55 = vmul.f32 %v4782_v56, %v2000_v52 }
 0x5b0   :  { %4254 = vmatpush3.bf16.msra.mxu0 %v4676_v15  ;;  %3939 = vmatprep.mubr.msk.f32.mxu0 %vm4526_vm0, %v4527_v1 }
 0x5b1   :  { %v2219_v59 = vpop.f32.mrb[14].mxu1  ;;  %4255 = vmatprep.subr.bf16.mxu0 %v4525_v0  ;;  %v4362_v60 = vadd.f32 %v2298_v55, %v219_v53  ;;  %v174_v55 = vmul.f32 %v4730_v34, %v5063_v50 }
 0x5b2   :  { %v2220_v61 = vadd.f32 %v2219_v59, %v187_v58  ;;  %v3930_v63 = vpop.f32.mrb[15].mxu1 }
 0x5b4   :  { %v2224_v2 = vadd.f32 %v2223_v62, %v2220_v61  ;;  %4257 = vmatpush3.bf16.msra.mxu0 %v4682_v18 }
 0x5b5   :  { %4258 = vmatprep.subr.bf16.mxu0 %v4525_v0 }
 0x5b6   :  { %v2226_v3 = vmul.f32 0.01, %v2224_v2  ;;  %vm2225_vm1 = vcmp.ge.f32.partialorder %v2224_v2, 0.0 }
 0x5b7   :  { %3940 = vmatmul.mubr.msk.f32.vlgmr.msra.gmra.mrb[16].mxu0 %vm254_vm2, %v2000_v52 }
 0x5b8   :  { %4260 = vmatpush3.bf16.msra.mxu0 %v4695_v21  ;;  %3950 = vmatprep.mubr.msk.f32.mxu0 %vm4526_vm0, %v4527_v1  ;;  %v2227_v4 = vsel %vm2225_vm1, %v2224_v2, %v2226_v3 }
 0x5b9   :  { %4261 = vmatprep.subr.bf16.mxu0 %v4525_v0  ;;  %v2599_v40 = vmul.f32 %v4738_v38, %v2227_v4 }
 0x5bc   :  { %4263 = vmatpush3.bf16.msra.mxu0 %v4705_v24 }
 0x5bd   :  { %4276 = vmatprep.subr.bf16.mxu0 %v4525_v0 }
 0x5bf   :  { %3951 = vmatmul.mubr.msk.f32.vlgmr.msra.gmra.mrb[16].mxu0 %vm254_vm2, %v2227_v4 }
 0x5c0   :  { %4278 = vmatpush3.bf16.msra.mxu0 %v4655_v6  ;;  %3983 = vmatprep.mubr.msk.f32.mxu0 %vm4526_vm0, %v4527_v1 }
 0x5c1   :  { %4279 = vmatprep.subr.bf16.mxu0 %v4525_v0 }
 0x5c4   :  { %4281 = vmatpush3.bf16.msra.mxu0 %v4661_v9 }
 0x5c5   :  { %4294 = vmatprep.subr.bf16.mxu0 %v4525_v0 }
 0x5c7   :  { %3984 = vmatmul.mubr.msk.f32.vlgmr.msra.gmra.mrb[18].mxu0 %vm254_vm2, %v2227_v4 }
 0x5c8   :  { %4296 = vmatpush3.bf16.msra.mxu0 %v4709_v28  ;;  %4016 = vmatprep.mubr.msk.f32.mxu0 %vm4526_vm0, %v4527_v1 }
 0x5c9   :  { %4297 = vmatprep.subr.bf16.mxu0 %v4525_v0 }
 0x5cc   :  { %4299 = vmatpush3.bf16.msra.mxu0 %v4712_v30 }
 0x5cd   :  { %4300 = vmatprep.subr.bf16.mxu0 %v4525_v0 }
 0x682   :  { %v2145_v5 = vpop.f32.mrb[14].mxu0 }
 0x683   :  { %v4361_v7 = vadd.f32 %v4360_v35, %v2145_v5  ;;  %v3919_v8 = vpop.f32.mrb[15].mxu0 }
 0x685   :  { %vm2150_vm3 = vcmp.ge.f32.partialorder %v4361_v7, 0.0  ;;  %v2151_v11 = vmul.f32 0.01, %v4361_v7 }
 0x687   :  { %v2152_v12 = vsel %vm2150_vm3, %v4361_v7, %v2151_v11  ;;  %v3281_v11 = vld [vmem:[%s5136_s6] sm:$0xff] }
 0x688   :  { %3962 = vmatmul.mubr.msk.f32.vlgmr.msra.gmra.mrb[16].mxu1 %vm254_vm2, %v2152_v12  ;;  %v2450_v14 = vmul.f32 %v4826_v26, %v2152_v12  ;;  %v3282_v12 = vld [vmem:[%s5136_s6 + $0x8] sm:$0xff] }
 0x689   :  { %4272 = vmatpush3.bf16.msra.mxu1 %v4722_v33  ;;  %3972 = vmatprep.mubr.msk.f32.mxu1 %vm4526_vm0, %v4527_v1 }
 0x68a   :  { %4273 = vmatprep.subr.bf16.mxu1 %v4525_v0  ;;  %v4364_v16 = vadd.f32 %v2450_v14, %v251_v13  ;;  %v4337_v13 = vpack.c.bf16 %v3282_v12, %v3281_v11 }
 0x68d   :  { %4275 = vmatpush3.bf16.msra.mxu1 %v4762_v49 }
 0x68e   :  { %4282 = vmatprep.subr.bf16.mxu1 %v4525_v0 }
 0x692   :  { %v2369_v19 = vpop.f32.mrb[16].mxu0 }
 0x693   :  { %v4363_v20 = vadd.f32 %v4362_v60, %v2369_v19  ;;  %v3952_v22 = vpop.f32.mrb[17].mxu0  ;;  %v189_v60 = vadd.f32 %v4736_v37, %v174_v55 }
 0x695   :  { %vm2374_vm4 = vcmp.ge.f32.partialorder %v4363_v20, 0.0  ;;  %v2375_v29 = vmul.f32 0.01, %v4363_v20 }
 0x697   :  { %v2376_v31 = vsel %vm2374_vm4, %v4363_v20, %v2375_v29 }
 0x698   :  { %3973 = vmatmul.mubr.msk.f32.vlgmr.msra.gmra.mrb[16].mxu1 %vm254_vm2, %v2376_v31 }
 0x699   :  { %4284 = vmatpush3.bf16.msra.mxu1 %v4676_v15  ;;  %3994 = vmatprep.mubr.msk.f32.mxu1 %vm4526_vm0, %v4527_v1 }
 0x69a   :  { %v2595_v36 = vpop.f32.mrb[18].mxu0  ;;  %4285 = vmatprep.subr.bf16.mxu1 %v4525_v0 }
 0x69b   :  { %v2596_v39 = vadd.f32 %v2595_v36, %v188_v32  ;;  %v3985_v41 = vpop.f32.mrb[19].mxu0 }
 0x69c   :  { %v3438_v41 = vld [vmem:[%s5137_s7] ss:$0 sm:$0xff] }
 0x69d   :  { %v2600_v42 = vadd.f32 %v2599_v40, %v2596_v39  ;;  %4287 = vmatpush3.bf16.msra.mxu1 %v4682_v18 }
 0x69e   :  { %4288 = vmatprep.subr.bf16.mxu1 %v4525_v0 }
 0x69f   :  { %v2602_v43 = vmul.f32 0.01, %v2600_v42  ;;  %vm2601_vm5 = vcmp.ge.f32.partialorder %v2600_v42, 0.0 }
 0x6a0   :  { %3995 = vmatmul.mubr.msk.f32.vlgmr.msra.gmra.mrb[18].mxu1 %vm254_vm2, %v2376_v31 }
 0x6a1   :  { %4290 = vmatpush3.bf16.msra.mxu1 %v4695_v21  ;;  %4005 = vmatprep.mubr.msk.f32.mxu1 %vm4526_vm0, %v4527_v1  ;;  %v2603_v35 = vsel %vm2601_vm5, %v2600_v42, %v2602_v43 }
 0x6a2   :  { %4291 = vmatprep.subr.bf16.mxu1 %v4525_v0  ;;  %v2975_v63 = vmul.f32 %v4738_v38, %v2603_v35 }
 0x6a5   :  { %4293 = vmatpush3.bf16.msra.mxu1 %v4705_v24 }
 0x6a6   :  { %4306 = vmatprep.subr.bf16.mxu1 %v4525_v0 }
 0x6a8   :  { %4006 = vmatmul.mubr.msk.f32.vlgmr.msra.gmra.mrb[18].mxu1 %vm254_vm2, %v2603_v35 }
 0x6a9   :  { %4308 = vmatpush3.bf16.msra.mxu1 %v4655_v6  ;;  %4038 = vmatprep.mubr.msk.f32.mxu1 %vm4526_vm0, %v4527_v1 }
 0x6aa   :  { %4309 = vmatprep.subr.bf16.mxu1 %v4525_v0 }
 0x6ad   :  { %4311 = vmatpush3.bf16.msra.mxu1 %v4661_v9 }
 0x6ae   :  { %4324 = vmatprep.subr.bf16.mxu1 %v4525_v0 }
 0x6b0   :  { %4039 = vmatmul.mubr.msk.f32.vlgmr.msra.gmra.mrb[20].mxu1 %vm254_vm2, %v2603_v35 }
 0x6b1   :  { %4326 = vmatpush3.bf16.msra.mxu1 %v4709_v28  ;;  %4071 = vmatprep.mubr.msk.f32.mxu1 %vm4526_vm0, %v4527_v1  ;;  %v204_v28 = vmul.f32 %v4778_v54, %v5018_v17 }
 0x6b2   :  { %4327 = vmatprep.subr.bf16.mxu1 %v4525_v0 }
 0x6b3   :  { %v220_v47 = vadd.f32 %v4784_v57, %v204_v28 }
 0x6b5   :  { %4329 = vmatpush3.bf16.msra.mxu1 %v4712_v30  ;;  %v2674_v30 = vmul.f32 %v4782_v56, %v2376_v31 }
 0x6b6   :  { %4330 = vmatprep.subr.bf16.mxu1 %v4525_v0 }
 0x6b7   :  { %v4366_v48 = vadd.f32 %v2674_v30, %v220_v47 }
 0x76b   :  { %v2521_v6 = vpop.f32.mrb[16].mxu1 }
 0x76c   :  { %v4365_v44 = vadd.f32 %v4364_v16, %v2521_v6  ;;  %v3974_v45 = vpop.f32.mrb[17].mxu1 }
 0x76e   :  { %vm2526_vm6 = vcmp.ge.f32.partialorder %v4365_v44, 0.0  ;;  %v2527_v9 = vmul.f32 0.01, %v4365_v44 }
 0x770   :  { %v2528_v46 = vsel %vm2526_vm6, %v4365_v44, %v2527_v9 }
 0x771   :  { %4017 = vmatmul.mubr.msk.f32.vlgmr.msra.gmra.mrb[20].mxu0 %vm254_vm2, %v2528_v46 }
 0x772   :  { %4302 = vmatpush3.bf16.msra.mxu0 %v4722_v33  ;;  %4027 = vmatprep.mubr.msk.f32.mxu0 %vm4526_vm0, %v4527_v1 }
 0x773   :  { %4303 = vmatprep.subr.bf16.mxu0 %v4525_v0 }
 0x776   :  { %4305 = vmatpush3.bf16.msra.mxu0 %v4762_v49 }
 0x777   :  { %4312 = vmatprep.subr.bf16.mxu0 %v4525_v0 }
 0x77b   :  { %v2745_v51 = vpop.f32.mrb[18].mxu1 }
 0x77c   :  { %v4367_v52 = vadd.f32 %v4366_v48, %v2745_v51  ;;  %v4007_v53 = vpop.f32.mrb[19].mxu1 }
 0x77e   :  { %vm2750_vm7 = vcmp.ge.f32.partialorder %v4367_v52, 0.0  ;;  %v2751_v58 = vmul.f32 0.01, %v4367_v52 }
 0x780   :  { %v2752_v59 = vsel %vm2750_vm7, %v4367_v52, %v2751_v58 }
 0x781   :  { %4028 = vmatmul.mubr.msk.f32.vlgmr.msra.gmra.mrb[20].mxu0 %vm254_vm2, %v2752_v59  ;;  %v3050_v14 = vmul.f32 %v4782_v56, %v2752_v59  ;;  %v3284_v56 = vld [vmem:[%s5136_s6 + $0x18] sm:$0xff] }
 0x782   :  { %4314 = vmatpush3.bf16.msra.mxu0 %v4676_v15  ;;  %4049 = vmatprep.mubr.msk.f32.mxu0 %vm4526_vm0, %v4527_v1 }
 0x783   :  { %v2971_v61 = vpop.f32.mrb[20].mxu1  ;;  %4315 = vmatprep.subr.bf16.mxu0 %v4525_v0 }
 0x784   :  { %v2972_v62 = vadd.f32 %v2971_v61, %v189_v60  ;;  %v4040_v2 = vpop.f32.mrb[21].mxu1 }
 0x786   :  { %v2976_v34 = vadd.f32 %v2975_v63, %v2972_v62  ;;  %4317 = vmatpush3.bf16.msra.mxu0 %v4682_v18  ;;  %v236_v18 = vmul.f32 %v4822_v23, %v5018_v17 }
 0x787   :  { %4318 = vmatprep.subr.bf16.mxu0 %v4525_v0 }
 0x788   :  { %v2978_v15 = vmul.f32 0.01, %v2976_v34  ;;  %vm2977_vm8 = vcmp.ge.f32.partialorder %v2976_v34, 0.0  ;;  %v252_v38 = vadd.f32 %v4828_v27, %v236_v18 }
 0x789   :  { %4050 = vmatmul.mubr.msk.f32.vlgmr.msra.gmra.mrb[22].mxu0 %vm254_vm2, %v2752_v59 }
 0x78a   :  { %4320 = vmatpush3.bf16.msra.mxu0 %v4695_v21  ;;  %4060 = vmatprep.mubr.msk.f32.mxu0 %vm4526_vm0, %v4527_v1  ;;  %v5083_v37 = vsel %vm2977_vm8, %v2976_v34, %v2978_v15  ;;  %v2826_v21 = vmul.f32 %v4826_v26, %v2528_v46 }
 0x78b   :  { %4321 = vmatprep.subr.bf16.mxu0 %v4525_v0 }
 0x78c   :  { %v4368_v3 = vadd.f32 %v2826_v21, %v252_v38 }
 0x78e   :  { %4323 = vmatpush3.bf16.msra.mxu0 %v4705_v24 }
 0x78f   :  { %4336 = vmatprep.subr.bf16.mxu0 %v4525_v0 }
 0x791   :  { %4061 = vmatmul.mubr.msk.f32.vlgmr.msra.gmra.mrb[22].mxu0 %vm254_vm2, %v5083_v37 }
 0x792   :  { %4093 = vmatprep.mubr.msk.f32.mxu0 %vm4526_vm0, %v4527_v1  ;;  %4338 = vmatpush3.bf16.msra.mxu0 %v4337_v13 }
 0x793   :  { %4339 = vmatprep.subr.bf16.mxu0 %v4525_v0 }
 0x854   :  { %v2897_v4 = vpop.f32.mrb[20].mxu0 }
 0x855   :  { %v4369_v24 = vadd.f32 %v4368_v3, %v2897_v4  ;;  %v4029_v5 = vpop.f32.mrb[21].mxu0 }
 0x857   :  { %vm2902_vm9 = vcmp.ge.f32.partialorder %v4369_v24, 0.0  ;;  %v2903_v7 = vmul.f32 0.01, %v4369_v24 }
 0x859   :  { %v2904_v8 = vsel %vm2902_vm9, %v4369_v24, %v2903_v7 }
 0x85a   :  { %4072 = vmatmul.mubr.msk.f32.vlgmr.msra.gmra.mrb[22].mxu1 %vm254_vm2, %v2904_v8  ;;  %v3202_v22 = vmul.f32 %v4826_v26, %v2904_v8 }
 0x85b   :  { %4332 = vmatpush3.bf16.msra.mxu1 %v4722_v33  ;;  %4082 = vmatprep.mubr.msk.f32.mxu1 %vm4526_vm0, %v4527_v1  ;;  %v221_v1 = vadd.f32 %v4784_v57, %v205_v10  ;;  %v237_v57 = vmul.f32 %v4822_v23, %v5063_v50 }
 0x85c   :  { %4333 = vmatprep.subr.bf16.mxu1 %v4525_v0 }
 0x85d   :  { %v4370_v33 = vadd.f32 %v3050_v14, %v221_v1  ;;  %v253_v25 = vadd.f32 %v4828_v27, %v237_v57 }
 0x85f   :  { %4335 = vmatpush3.bf16.msra.mxu1 %v4762_v49  ;;  %v3283_v49 = vld [vmem:[%s5136_s6 + $0x10] sm:$0xff]  ;;  %v4372_v29 = vadd.f32 %v3202_v22, %v253_v25 }
 0x860   :  { %v4340_v0 = vpack.c.bf16 %v3284_v56, %v3283_v49 }
 0x862   :  { %4341 = vmatpush3.bf16.msra.mxu0 %v4340_v0 }
 0x864   :  { %v3121_v54 = vpop.f32.mrb[22].mxu0 }
 0x865   :  { %v4371_v16 = vadd.f32 %v4370_v33, %v3121_v54  ;;  %v4062_v17 = vpop.f32.mrb[23].mxu0 }
 0x867   :  { %v3127_v19 = vmul.f32 0.01, %v4371_v16  ;;  %vm3126_vm0 = vcmp.ge.f32.partialorder %v4371_v16, 0.0 }
 0x869   :  { %v3128_v20 = vsel %vm3126_vm0, %v4371_v16, %v3127_v19 }
 0x86a   :  { %3365 = vrot.lane.b32.xlu0 %v3128_v20, %s4529_s22  ;;  %4083 = vmatmul.mubr.msk.f32.vlgmr.msra.gmra.mrb[22].mxu1 %vm254_vm2, %v3128_v20 }
 0x8dc   :  { %v3366_v27 = vpop.permute.xlu0 %3365 }
 0x8dd   :  { %v3375_v35 = vsel %vm254_vm2, %v5083_v37, %v3366_v27 }
 0x93d   :  { %v3273_v31 = vpop.f32.mrb[22].mxu1 }
 0x93e   :  { %v4373_v32 = vadd.f32 %v4372_v29, %v3273_v31  ;;  %v4084_v36 = vpop.f32.mrb[23].mxu1 }
 0x940   :  { %v3279_v39 = vmul.f32 0.01, %v4373_v32  ;;  %vm3278_vm10 = vcmp.ge.f32.partialorder %v4373_v32, 0.0 }
 0x942   :  { %v3280_v40 = vsel %vm3278_vm10, %v4373_v32, %v3279_v39 }
 0x943   :  { %3368 = vrot.lane.b32.xlu1 %v3280_v40, %s4530_s25  ;;  %4094 = vmatmul.mubr.msk.f32.vlgmr.msra.gmra.mrb[24].mxu0 %vm254_vm2, %v3280_v40 }
 0x9b5   :  { %v3369_v43 = vpop.permute.xlu1 %3368 }
 0x9b6   :  { %v3377_v6 = vsel %vm3376_vm11, %v3375_v35, %v3369_v43 }
 0xa16   :  { %v3361_v23 = vpop.f32.mrb[24].mxu0 }
 0xa17   :  { %v3362_v42 = vadd.f32 %v3438_v41, %v3361_v23  ;;  %v4095_v26 = vpop.f32.mrb[25].mxu0 }
 0xa19   :  { %3372 = vrot.lane.b32.xlu0 %v3362_v42, %s4531_s27 }
 0xa8b   :  { %v3373_v44 = vpop.permute.xlu0 %3372 }
 0xa8c   :  { %v3379_v45 = vsel %vm3378_vm12, %v3377_v6, %v3373_v44 }
 0xa8d   :  { %3380 = vst [vmem:[%s5138_s8] sm:$0xff] %v3379_v45 }
 0xa8e   :  { %3385 = vsyncpa [#allocation3], 1 }
 0xa8f   :  { %3386 = vsyncpa [#allocation5], 1 }
 0xa90   :  { %3387 = vsyncpa [#allocation8], 1 }

</bundles_post_ra>
